<compile_context>
chip_gen: v7x
topology: tpu7x:2x2x1
jax: 0.10.0
libtpu: 0.0.40
codegen_flags: <defaults>
</compile_context>

<pallas_src>
import functools

import jax
import jax.numpy as jnp
from jax.experimental import pallas as pl
from jax.experimental.pallas import tpu as pltpu


def _stats_kernel(*refs, n_preds, block_rows, binary_target):
    """Accumulate BCE / Dice partial sums for n_preds predictions vs one target.

    refs = (pred_0, ..., pred_{n-1}, target,     # inputs,  each (1, TR, L)
            bce_acc, pt_acc, p_acc, t_acc)       # outputs, (1, P, 8, L) x3, (1, 8, L)
    """
    pred_refs = refs[:n_preds]
    tgt_ref = refs[n_preds]
    bce_ref, pt_ref, psum_ref, tsum_ref = refs[n_preds + 1:n_preds + 5]

    k = pl.program_id(1)

    @pl.when(k == 0)
    def _init():
        bce_ref[...] = jnp.zeros_like(bce_ref)
        pt_ref[...] = jnp.zeros_like(pt_ref)
        psum_ref[...] = jnp.zeros_like(psum_ref)
        tsum_ref[...] = jnp.zeros_like(tsum_ref)

    def fold_rows(x):
        # (block_rows, L) -> (8, L): aligned static sublane-group slices,
        # VPU adds only (no cross-lane XLU work inside the loop).
        acc = x[0:8, :]
        for r in range(1, block_rows // 8):
            acc = acc + x[r * 8:(r + 1) * 8, :]
        return acc

    t = tgt_ref[0].astype(jnp.float32)          # (TR, L)
    tsum_ref[0] += fold_rows(t)

    if not binary_target:
        one_minus_t = 1.0 - t

    for i in range(n_preds):
        p = pred_refs[i][0].astype(jnp.float32)  # (TR, L)
        if binary_target:
            # Hard {0,1} targets: one transcendental per element.
            sel = jnp.where(t > 0.5, p, 1.0 - p)
            bce = -jnp.maximum(jnp.log(sel), jnp.float32(-100.0))
        else:
            # nn.BCELoss semantics (soft targets allowed), logs clamped at -100.
            log_p = jnp.maximum(jnp.log(p), jnp.float32(-100.0))
            log_1mp = jnp.maximum(jnp.log(1.0 - p), jnp.float32(-100.0))
            bce = -(t * log_p + one_minus_t * log_1mp)
        bce_ref[0, i] += fold_rows(bce)
        pt_ref[0, i] += fold_rows(p * t)
        psum_ref[0, i] += fold_rows(p)


def _pad_reshape(x, batch, r_pad, lanes):
    """(B, ...) -> (B, r_pad, lanes), zero padded (keeps input dtype)."""
    x2 = x.reshape(batch, -1)
    f = x2.shape[1]
    f_pad = r_pad * lanes
    if f_pad != f:
        x2 = jnp.pad(x2, ((0, 0), (0, f_pad - f)))
    return x2.reshape(batch, r_pad, lanes)


def _fused_bce_dice_stats(preds, target, *, lanes=512, max_block_rows=256,
                          binary_target=False):
    """One-pass partial sums for BCE + Dice for every prediction vs target."""
    n_preds = len(preds)
    batch = target.shape[0]
    n_elem = 1
    for d in target.shape[1:]:
        n_elem *= d
    for p in preds:
        assert p.shape == target.shape, (p.shape, target.shape)

    rows = -(-n_elem // lanes)                        # ceil(F / lanes)
    n_blocks = max(1, -(-rows // max_block_rows))     # number of reduction steps
    tr = ((-(-rows // n_blocks) + 7) // 8) * 8        # balanced, sublane-aligned
    r_pad = n_blocks * tr

    preds3 = [_pad_reshape(p, batch, r_pad, lanes) for p in preds]
    tgt3 = _pad_reshape(target, batch, r_pad, lanes)

    kernel = functools.partial(_stats_kernel, n_preds=n_preds, block_rows=tr,
                               binary_target=binary_target)

    io_spec = pl.BlockSpec((1, tr, lanes), lambda b, k: (b, k, 0))
    acc_spec = pl.BlockSpec((1, n_preds, 8, lanes), lambda b, k: (b, 0, 0, 0))
    tacc_spec = pl.BlockSpec((1, 8, lanes), lambda b, k: (b, 0, 0))

    out_shape = (
        jax.ShapeDtypeStruct((batch, n_preds, 8, lanes), jnp.float32),  # bce
        jax.ShapeDtypeStruct((batch, n_preds, 8, lanes), jnp.float32),  # p*t
        jax.ShapeDtypeStruct((batch, n_preds, 8, lanes), jnp.float32),  # p
        jax.ShapeDtypeStruct((batch, 8, lanes), jnp.float32),           # t
    )

    bce_p, pt_p, ps_p, ts_p = pl.pallas_call(
        kernel,
        out_shape=out_shape,
        grid_spec=pltpu.PrefetchScalarGridSpec(
            num_scalar_prefetch=0,
            grid=(batch, n_blocks),
            in_specs=[io_spec] * (n_preds + 1),
            out_specs=[acc_spec, acc_spec, acc_spec, tacc_spec],
        ),
        compiler_params=pltpu.CompilerParams(
            dimension_semantics=("parallel", "arbitrary")),
    )(*preds3, tgt3)

    # Final (tiny) cross-lane reductions done once, outside the kernel.
    bce_sum = bce_p.sum(axis=(0, 2, 3))   # (P,)   global BCE sums
    pt_sum = pt_p.sum(axis=(2, 3))        # (B, P) per-sample sum(p*t)
    p_sum = ps_p.sum(axis=(2, 3))         # (B, P) per-sample sum(p)
    t_sum = ts_p.sum(axis=(1, 2))         # (B,)   per-sample sum(t)
    return bce_sum, pt_sum, p_sum, t_sum, n_elem


def bce_dice_losses(preds, target, *, wb=1.0, wd=1.0, binary_target=False):
    """wb*BCE + wd*Dice for every prediction vs the shared target (one HBM pass)."""
    bce_sum, pt_sum, p_sum, t_sum, n_elem = _fused_bce_dice_stats(
        preds, target, binary_target=binary_target)
    batch = target.shape[0]
    bce = bce_sum / jnp.float32(batch * n_elem)                            # (P,)
    smooth = jnp.float32(1.0)
    dice_score = (2.0 * pt_sum + smooth) / (p_sum + t_sum[:, None] + smooth)
    dice = 1.0 - dice_score.sum(axis=0) / jnp.float32(batch)               # (P,)
    return wb * bce + wd * dice


def gt_bce_dice_loss(gt_pre, out, target, *, wb=1.0, wd=1.0, binary_target=False):
    """GT_BceDiceLoss.forward: gt_pre = (gt_pre5, gt_pre4, gt_pre3, gt_pre2, gt_pre1)."""
    preds = (out,) + tuple(gt_pre)
    losses = bce_dice_losses(preds, target, wb=wb, wd=wd,
                             binary_target=binary_target)
    weights = jnp.asarray([1.0, 0.1, 0.2, 0.3, 0.4, 0.5], jnp.float32)
    return jnp.sum(weights * losses)


# ---------------------- pure-JAX reference (for testing) ----------------------

def _bce_dice_ref(pred, target, wb=1.0, wd=1.0):
    b = pred.shape[0]
    p = pred.reshape(b, -1).astype(jnp.float32)
    t = target.reshape(b, -1).astype(jnp.float32)
    log_p = jnp.maximum(jnp.log(p), -100.0)
    log_1mp = jnp.maximum(jnp.log(1.0 - p), -100.0)
    bce = jnp.mean(-(t * log_p + (1.0 - t) * log_1mp))
    smooth = 1.0
    inter = (p * t).sum(axis=1)
    dice_score = (2.0 * inter + smooth) / (p.sum(axis=1) + t.sum(axis=1) + smooth)
    dice = 1.0 - dice_score.sum() / b
    return wb * bce + wd * dice


def _gt_bce_dice_ref(gt_pre, out, target):
    loss = _bce_dice_ref(out, target)
    for w, gp in zip((0.1, 0.2, 0.3, 0.4, 0.5), gt_pre):
        loss = loss + w * _bce_dice_ref(gp, target)
    return loss


if __name__ == "__main__":
    key = jax.random.PRNGKey(0)
    B, C, H, W = 2, 4, 16, 16
    keys = jax.random.split(key, 8)

    out = jax.nn.sigmoid(jax.random.normal(keys[0], (B, C, H, W), jnp.float32))
    gt_pre = tuple(
        jax.nn.sigmoid(jax.random.normal(keys[1 + i], (B, C, H, W), jnp.float32))
        for i in range(5))
    target = (jax.random.uniform(keys[6], (B, C, H, W)) > 0.5).astype(jnp.float32)

    loss = gt_bce_dice_loss(gt_pre, out, target)
    loss = jax.block_until_ready(loss)

    ref = _gt_bce_dice_ref(gt_pre, out, target)
    assert jnp.allclose(loss, ref, rtol=1e-4, atol=2e-5), (loss, ref)

    # Single-log fast path (valid for hard {0,1} ground-truth masks).
    loss_bin = jax.block_until_ready(
        gt_bce_dice_loss(gt_pre, out, target, binary_target=True))
    assert jnp.allclose(loss_bin, ref, rtol=1e-4, atol=2e-5), (loss_bin, ref)

    print("KERNEL_OK")
</pallas_src>

<mosaic_0001>
module attributes {stable_mosaic.version = 11 : i64} {
  func.func @_stats_kernel(%arg0: i32, %arg1: i32, %arg2: memref<1x8x512xf32, #tpu.memory_space<vmem>>, %arg3: memref<1x8x512xf32, #tpu.memory_space<vmem>>, %arg4: memref<1x8x512xf32, #tpu.memory_space<vmem>>, %arg5: memref<1x8x512xf32, #tpu.memory_space<vmem>>, %arg6: memref<1x8x512xf32, #tpu.memory_space<vmem>>, %arg7: memref<1x8x512xf32, #tpu.memory_space<vmem>>, %arg8: memref<1x8x512xf32, #tpu.memory_space<vmem>>, %arg9: memref<1x6x8x512xf32, #tpu.memory_space<vmem>>, %arg10: memref<1x6x8x512xf32, #tpu.memory_space<vmem>>, %arg11: memref<1x6x8x512xf32, #tpu.memory_space<vmem>>, %arg12: memref<1x8x512xf32, #tpu.memory_space<vmem>>) attributes {dimension_semantics = [#tpu.dimension_semantics<parallel>, #tpu.dimension_semantics<arbitrary>], iteration_bounds = array<i64: 2, 1>, scalar_prefetch = 0 : i64, scratch_operands = 0 : i64, tpu.core_type = #tpu.core_type<tc>, window_params = [{transform_indices = @transform_0, window_bounds = array<i64: 1, 8, 512>}, {transform_indices = @transform_1, window_bounds = array<i64: 1, 8, 512>}, {transform_indices = @transform_2, window_bounds = array<i64: 1, 8, 512>}, {transform_indices = @transform_3, window_bounds = array<i64: 1, 8, 512>}, {transform_indices = @transform_4, window_bounds = array<i64: 1, 8, 512>}, {transform_indices = @transform_5, window_bounds = array<i64: 1, 8, 512>}, {transform_indices = @transform_6, window_bounds = array<i64: 1, 8, 512>}, {transform_indices = @transform_7, window_bounds = array<i64: 1, 6, 8, 512>}, {transform_indices = @transform_8, window_bounds = array<i64: 1, 6, 8, 512>}, {transform_indices = @transform_9, window_bounds = array<i64: 1, 6, 8, 512>}, {transform_indices = @transform_10, window_bounds = array<i64: 1, 8, 512>}]} {
    %c0_i32 = arith.constant 0 : i32
    %0 = arith.cmpi eq, %arg1, %c0_i32 : i32
    %1 = arith.extui %0 : i1 to i32
    %c0_i32_0 = arith.constant 0 : i32
    %2 = arith.cmpi ne, %1, %c0_i32_0 : i32
    scf.if %2 {
      %cst_190 = arith.constant 0.000000e+00 : f32
      %217 = vector.broadcast %cst_190 : f32 to vector<1x6x8x512xf32>
      %c0_191 = arith.constant 0 : index
      %c0_192 = arith.constant 0 : index
      %c0_193 = arith.constant 0 : index
      %c0_194 = arith.constant 0 : index
      %218 = vector.load %arg9[%c0_191, %c0_192, %c0_193, %c0_194] : memref<1x6x8x512xf32, #tpu.memory_space<vmem>>, vector<1x6x8x512xf32>
      tpu.vector_store %arg9[%c0_191, %c0_192, %c0_193, %c0_194], %217 {strides = array<i32>} : memref<1x6x8x512xf32, #tpu.memory_space<vmem>>, vector<1x6x8x512xf32>,
      %cst_195 = arith.constant 0.000000e+00 : f32
      %219 = vector.broadcast %cst_195 : f32 to vector<1x6x8x512xf32>
      %c0_196 = arith.constant 0 : index
      %c0_197 = arith.constant 0 : index
      %c0_198 = arith.constant 0 : index
      %c0_199 = arith.constant 0 : index
      %220 = vector.load %arg10[%c0_196, %c0_197, %c0_198, %c0_199] : memref<1x6x8x512xf32, #tpu.memory_space<vmem>>, vector<1x6x8x512xf32>
      tpu.vector_store %arg10[%c0_196, %c0_197, %c0_198, %c0_199], %219 {strides = array<i32>} : memref<1x6x8x512xf32, #tpu.memory_space<vmem>>, vector<1x6x8x512xf32>,
      %cst_200 = arith.constant 0.000000e+00 : f32
      %221 = vector.broadcast %cst_200 : f32 to vector<1x6x8x512xf32>
      %c0_201 = arith.constant 0 : index
      %c0_202 = arith.constant 0 : index
      %c0_203 = arith.constant 0 : index
      %c0_204 = arith.constant 0 : index
      %222 = vector.load %arg11[%c0_201, %c0_202, %c0_203, %c0_204] : memref<1x6x8x512xf32, #tpu.memory_space<vmem>>, vector<1x6x8x512xf32>
      tpu.vector_store %arg11[%c0_201, %c0_202, %c0_203, %c0_204], %221 {strides = array<i32>} : memref<1x6x8x512xf32, #tpu.memory_space<vmem>>, vector<1x6x8x512xf32>,
      %cst_205 = arith.constant 0.000000e+00 : f32
      %223 = vector.broadcast %cst_205 : f32 to vector<1x8x512xf32>
      %c0_206 = arith.constant 0 : index
      %c0_207 = arith.constant 0 : index
      %c0_208 = arith.constant 0 : index
      %224 = vector.load %arg12[%c0_206, %c0_207, %c0_208] : memref<1x8x512xf32, #tpu.memory_space<vmem>>, vector<1x8x512xf32>
      tpu.vector_store %arg12[%c0_206, %c0_207, %c0_208], %223 {strides = array<i32>} : memref<1x8x512xf32, #tpu.memory_space<vmem>>, vector<1x8x512xf32>,
    } else {
    }
    %c0 = arith.constant 0 : index
    %c0_1 = arith.constant 0 : index
    %c0_2 = arith.constant 0 : index
    %3 = vector.load %arg8[%c0, %c0_1, %c0_2] : memref<1x8x512xf32, #tpu.memory_space<vmem>>, vector<1x8x512xf32>
    %4 = vector.shape_cast %3 : vector<1x8x512xf32> to vector<8x512xf32>
    %c0_3 = arith.constant 0 : index
    %c0_4 = arith.constant 0 : index
    %c0_5 = arith.constant 0 : index
    %5 = vector.load %arg12[%c0_3, %c0_4, %c0_5] : memref<1x8x512xf32, #tpu.memory_space<vmem>>, vector<1x8x512xf32>
    %6 = vector.shape_cast %5 : vector<1x8x512xf32> to vector<8x512xf32>
    %7 = arith.addf %6, %4 : vector<8x512xf32>
    %c0_6 = arith.constant 0 : index
    %c0_7 = arith.constant 0 : index
    %c0_8 = arith.constant 0 : index
    %8 = vector.load %arg12[%c0_6, %c0_7, %c0_8] : memref<1x8x512xf32, #tpu.memory_space<vmem>>, vector<1x8x512xf32>
    %9 = vector.shape_cast %8 : vector<1x8x512xf32> to vector<8x512xf32>
    %10 = vector.shape_cast %7 : vector<8x512xf32> to vector<1x8x512xf32>
    tpu.vector_store %arg12[%c0_6, %c0_7, %c0_8], %10 {strides = array<i32>} : memref<1x8x512xf32, #tpu.memory_space<vmem>>, vector<1x8x512xf32>,
    %cst = arith.constant 1.000000e+00 : f32
    %11 = vector.broadcast %cst : f32 to vector<8x512xf32>
    %12 = arith.subf %11, %4 : vector<8x512xf32>
    %c0_9 = arith.constant 0 : index
    %c0_10 = arith.constant 0 : index
    %c0_11 = arith.constant 0 : index
    %13 = vector.load %arg2[%c0_9, %c0_10, %c0_11] : memref<1x8x512xf32, #tpu.memory_space<vmem>>, vector<1x8x512xf32>
    %14 = vector.shape_cast %13 : vector<1x8x512xf32> to vector<8x512xf32>
    %15 = math.log %14 : vector<8x512xf32>
    %cst_12 = arith.constant -1.000000e+02 : f32
    %16 = vector.broadcast %cst_12 : f32 to vector<8x512xf32>
    %17 = arith.maximumf %15, %16 : vector<8x512xf32>
    %cst_13 = arith.constant 1.000000e+00 : f32
    %18 = vector.broadcast %cst_13 : f32 to vector<8x512xf32>
    %19 = arith.subf %18, %14 : vector<8x512xf32>
    %20 = math.log %19 : vector<8x512xf32>
    %cst_14 = arith.constant -1.000000e+02 : f32
    %21 = vector.broadcast %cst_14 : f32 to vector<8x512xf32>
    %22 = arith.maximumf %20, %21 : vector<8x512xf32>
    %23 = arith.mulf %4, %17 : vector<8x512xf32>
    %24 = arith.mulf %12, %22 : vector<8x512xf32>
    %25 = arith.addf %23, %24 : vector<8x512xf32>
    %cst_15 = arith.constant 0.000000e+00 : f32
    %26 = vector.broadcast %cst_15 : f32 to vector<8x512xf32>
    %27 = arith.subf %26, %25 : vector<8x512xf32>
    %c0_16 = arith.constant 0 : index
    %c0_17 = arith.constant 0 : index
    %c0_18 = arith.constant 0 : index
    %c0_19 = arith.constant 0 : index
    %28 = vector.load %arg9[%c0_16, %c0_17, %c0_18, %c0_19] : memref<1x6x8x512xf32, #tpu.memory_space<vmem>>, vector<1x1x8x512xf32>
    %29 = vector.shape_cast %28 : vector<1x1x8x512xf32> to vector<8x512xf32>
    %30 = arith.addf %29, %27 : vector<8x512xf32>
    %c0_20 = arith.constant 0 : index
    %c0_21 = arith.constant 0 : index
    %c0_22 = arith.constant 0 : index
    %c0_23 = arith.constant 0 : index
    %31 = vector.load %arg9[%c0_20, %c0_21, %c0_22, %c0_23] : memref<1x6x8x512xf32, #tpu.memory_space<vmem>>, vector<1x1x8x512xf32>
    %32 = vector.shape_cast %31 : vector<1x1x8x512xf32> to vector<8x512xf32>
    %33 = vector.shape_cast %30 : vector<8x512xf32> to vector<1x1x8x512xf32>
    tpu.vector_store %arg9[%c0_20, %c0_21, %c0_22, %c0_23], %33 {strides = array<i32>} : memref<1x6x8x512xf32, #tpu.memory_space<vmem>>, vector<1x1x8x512xf32>,
    %c0_24 = arith.constant 0 : index
    %c0_25 = arith.constant 0 : index
    %c0_26 = arith.constant 0 : index
    %c0_27 = arith.constant 0 : index
    %34 = vector.load %arg10[%c0_24, %c0_25, %c0_26, %c0_27] : memref<1x6x8x512xf32, #tpu.memory_space<vmem>>, vector<1x1x8x512xf32>
    %35 = vector.shape_cast %34 : vector<1x1x8x512xf32> to vector<8x512xf32>
    %36 = arith.mulf %14, %4 : vector<8x512xf32>
    %37 = arith.addf %35, %36 : vector<8x512xf32>
    %c0_28 = arith.constant 0 : index
    %c0_29 = arith.constant 0 : index
    %c0_30 = arith.constant 0 : index
    %c0_31 = arith.constant 0 : index
    %38 = vector.load %arg10[%c0_28, %c0_29, %c0_30, %c0_31] : memref<1x6x8x512xf32, #tpu.memory_space<vmem>>, vector<1x1x8x512xf32>
    %39 = vector.shape_cast %38 : vector<1x1x8x512xf32> to vector<8x512xf32>
    %40 = vector.shape_cast %37 : vector<8x512xf32> to vector<1x1x8x512xf32>
    tpu.vector_store %arg10[%c0_28, %c0_29, %c0_30, %c0_31], %40 {strides = array<i32>} : memref<1x6x8x512xf32, #tpu.memory_space<vmem>>, vector<1x1x8x512xf32>,
    %c0_32 = arith.constant 0 : index
    %c0_33 = arith.constant 0 : index
    %c0_34 = arith.constant 0 : index
    %c0_35 = arith.constant 0 : index
    %41 = vector.load %arg11[%c0_32, %c0_33, %c0_34, %c0_35] : memref<1x6x8x512xf32, #tpu.memory_space<vmem>>, vector<1x1x8x512xf32>
    %42 = vector.shape_cast %41 : vector<1x1x8x512xf32> to vector<8x512xf32>
    %43 = arith.addf %42, %14 : vector<8x512xf32>
    %c0_36 = arith.constant 0 : index
    %c0_37 = arith.constant 0 : index
    %c0_38 = arith.constant 0 : index
    %c0_39 = arith.constant 0 : index
    %44 = vector.load %arg11[%c0_36, %c0_37, %c0_38, %c0_39] : memref<1x6x8x512xf32, #tpu.memory_space<vmem>>, vector<1x1x8x512xf32>
    %45 = vector.shape_cast %44 : vector<1x1x8x512xf32> to vector<8x512xf32>
    %46 = vector.shape_cast %43 : vector<8x512xf32> to vector<1x1x8x512xf32>
    tpu.vector_store %arg11[%c0_36, %c0_37, %c0_38, %c0_39], %46 {strides = array<i32>} : memref<1x6x8x512xf32, #tpu.memory_space<vmem>>, vector<1x1x8x512xf32>,
    %c0_40 = arith.constant 0 : index
    %c0_41 = arith.constant 0 : index
    %c0_42 = arith.constant 0 : index
    %47 = vector.load %arg3[%c0_40, %c0_41, %c0_42] : memref<1x8x512xf32, #tpu.memory_space<vmem>>, vector<1x8x512xf32>
    %48 = vector.shape_cast %47 : vector<1x8x512xf32> to vector<8x512xf32>
    %49 = math.log %48 : vector<8x512xf32>
    %cst_43 = arith.constant -1.000000e+02 : f32
    %50 = vector.broadcast %cst_43 : f32 to vector<8x512xf32>
    %51 = arith.maximumf %49, %50 : vector<8x512xf32>
    %cst_44 = arith.constant 1.000000e+00 : f32
    %52 = vector.broadcast %cst_44 : f32 to vector<8x512xf32>
    %53 = arith.subf %52, %48 : vector<8x512xf32>
    %54 = math.log %53 : vector<8x512xf32>
    %cst_45 = arith.constant -1.000000e+02 : f32
    %55 = vector.broadcast %cst_45 : f32 to vector<8x512xf32>
    %56 = arith.maximumf %54, %55 : vector<8x512xf32>
    %57 = arith.mulf %4, %51 : vector<8x512xf32>
    %58 = arith.mulf %12, %56 : vector<8x512xf32>
    %59 = arith.addf %57, %58 : vector<8x512xf32>
    %cst_46 = arith.constant 0.000000e+00 : f32
    %60 = vector.broadcast %cst_46 : f32 to vector<8x512xf32>
    %61 = arith.subf %60, %59 : vector<8x512xf32>
    %c0_47 = arith.constant 0 : index
    %c1 = arith.constant 1 : index
    %c0_48 = arith.constant 0 : index
    %c0_49 = arith.constant 0 : index
    %62 = vector.load %arg9[%c0_47, %c1, %c0_48, %c0_49] : memref<1x6x8x512xf32, #tpu.memory_space<vmem>>, vector<1x1x8x512xf32>
    %63 = vector.shape_cast %62 : vector<1x1x8x512xf32> to vector<8x512xf32>
    %64 = arith.addf %63, %61 : vector<8x512xf32>
    %c0_50 = arith.constant 0 : index
    %c1_51 = arith.constant 1 : index
    %c0_52 = arith.constant 0 : index
    %c0_53 = arith.constant 0 : index
    %65 = vector.load %arg9[%c0_50, %c1_51, %c0_52, %c0_53] : memref<1x6x8x512xf32, #tpu.memory_space<vmem>>, vector<1x1x8x512xf32>
    %66 = vector.shape_cast %65 : vector<1x1x8x512xf32> to vector<8x512xf32>
    %67 = vector.shape_cast %64 : vector<8x512xf32> to vector<1x1x8x512xf32>
    tpu.vector_store %arg9[%c0_50, %c1_51, %c0_52, %c0_53], %67 {strides = array<i32>} : memref<1x6x8x512xf32, #tpu.memory_space<vmem>>, vector<1x1x8x512xf32>,
    %c0_54 = arith.constant 0 : index
    %c1_55 = arith.constant 1 : index
    %c0_56 = arith.constant 0 : index
    %c0_57 = arith.constant 0 : index
    %68 = vector.load %arg10[%c0_54, %c1_55, %c0_56, %c0_57] : memref<1x6x8x512xf32, #tpu.memory_space<vmem>>, vector<1x1x8x512xf32>
    %69 = vector.shape_cast %68 : vector<1x1x8x512xf32> to vector<8x512xf32>
    %70 = arith.mulf %48, %4 : vector<8x512xf32>
    %71 = arith.addf %69, %70 : vector<8x512xf32>
    %c0_58 = arith.constant 0 : index
    %c1_59 = arith.constant 1 : index
    %c0_60 = arith.constant 0 : index
    %c0_61 = arith.constant 0 : index
    %72 = vector.load %arg10[%c0_58, %c1_59, %c0_60, %c0_61] : memref<1x6x8x512xf32, #tpu.memory_space<vmem>>, vector<1x1x8x512xf32>
    %73 = vector.shape_cast %72 : vector<1x1x8x512xf32> to vector<8x512xf32>
    %74 = vector.shape_cast %71 : vector<8x512xf32> to vector<1x1x8x512xf32>
    tpu.vector_store %arg10[%c0_58, %c1_59, %c0_60, %c0_61], %74 {strides = array<i32>} : memref<1x6x8x512xf32, #tpu.memory_space<vmem>>, vector<1x1x8x512xf32>,
    %c0_62 = arith.constant 0 : index
    %c1_63 = arith.constant 1 : index
    %c0_64 = arith.constant 0 : index
    %c0_65 = arith.constant 0 : index
    %75 = vector.load %arg11[%c0_62, %c1_63, %c0_64, %c0_65] : memref<1x6x8x512xf32, #tpu.memory_space<vmem>>, vector<1x1x8x512xf32>
    %76 = vector.shape_cast %75 : vector<1x1x8x512xf32> to vector<8x512xf32>
    %77 = arith.addf %76, %48 : vector<8x512xf32>
    %c0_66 = arith.constant 0 : index
    %c1_67 = arith.constant 1 : index
    %c0_68 = arith.constant 0 : index
    %c0_69 = arith.constant 0 : index
    %78 = vector.load %arg11[%c0_66, %c1_67, %c0_68, %c0_69] : memref<1x6x8x512xf32, #tpu.memory_space<vmem>>, vector<1x1x8x512xf32>
    %79 = vector.shape_cast %78 : vector<1x1x8x512xf32> to vector<8x512xf32>
    %80 = vector.shape_cast %77 : vector<8x512xf32> to vector<1x1x8x512xf32>
    tpu.vector_store %arg11[%c0_66, %c1_67, %c0_68, %c0_69], %80 {strides = array<i32>} : memref<1x6x8x512xf32, #tpu.memory_space<vmem>>, vector<1x1x8x512xf32>,
    %c0_70 = arith.constant 0 : index
    %c0_71 = arith.constant 0 : index
    %c0_72 = arith.constant 0 : index
    %81 = vector.load %arg4[%c0_70, %c0_71, %c0_72] : memref<1x8x512xf32, #tpu.memory_space<vmem>>, vector<1x8x512xf32>
    %82 = vector.shape_cast %81 : vector<1x8x512xf32> to vector<8x512xf32>
    %83 = math.log %82 : vector<8x512xf32>
    %cst_73 = arith.constant -1.000000e+02 : f32
    %84 = vector.broadcast %cst_73 : f32 to vector<8x512xf32>
    %85 = arith.maximumf %83, %84 : vector<8x512xf32>
    %cst_74 = arith.constant 1.000000e+00 : f32
    %86 = vector.broadcast %cst_74 : f32 to vector<8x512xf32>
    %87 = arith.subf %86, %82 : vector<8x512xf32>
    %88 = math.log %87 : vector<8x512xf32>
    %cst_75 = arith.constant -1.000000e+02 : f32
    %89 = vector.broadcast %cst_75 : f32 to vector<8x512xf32>
    %90 = arith.maximumf %88, %89 : vector<8x512xf32>
    %91 = arith.mulf %4, %85 : vector<8x512xf32>
    %92 = arith.mulf %12, %90 : vector<8x512xf32>
    %93 = arith.addf %91, %92 : vector<8x512xf32>
    %cst_76 = arith.constant 0.000000e+00 : f32
    %94 = vector.broadcast %cst_76 : f32 to vector<8x512xf32>
    %95 = arith.subf %94, %93 : vector<8x512xf32>
    %c0_77 = arith.constant 0 : index
    %c2 = arith.constant 2 : index
    %c0_78 = arith.constant 0 : index
    %c0_79 = arith.constant 0 : index
    %96 = vector.load %arg9[%c0_77, %c2, %c0_78, %c0_79] : memref<1x6x8x512xf32, #tpu.memory_space<vmem>>, vector<1x1x8x512xf32>
    %97 = vector.shape_cast %96 : vector<1x1x8x512xf32> to vector<8x512xf32>
    %98 = arith.addf %97, %95 : vector<8x512xf32>
    %c0_80 = arith.constant 0 : index
    %c2_81 = arith.constant 2 : index
    %c0_82 = arith.constant 0 : index
    %c0_83 = arith.constant 0 : index
    %99 = vector.load %arg9[%c0_80, %c2_81, %c0_82, %c0_83] : memref<1x6x8x512xf32, #tpu.memory_space<vmem>>, vector<1x1x8x512xf32>
    %100 = vector.shape_cast %99 : vector<1x1x8x512xf32> to vector<8x512xf32>
    %101 = vector.shape_cast %98 : vector<8x512xf32> to vector<1x1x8x512xf32>
    tpu.vector_store %arg9[%c0_80, %c2_81, %c0_82, %c0_83], %101 {strides = array<i32>} : memref<1x6x8x512xf32, #tpu.memory_space<vmem>>, vector<1x1x8x512xf32>,
    %c0_84 = arith.constant 0 : index
    %c2_85 = arith.constant 2 : index
    %c0_86 = arith.constant 0 : index
    %c0_87 = arith.constant 0 : index
    %102 = vector.load %arg10[%c0_84, %c2_85, %c0_86, %c0_87] : memref<1x6x8x512xf32, #tpu.memory_space<vmem>>, vector<1x1x8x512xf32>
    %103 = vector.shape_cast %102 : vector<1x1x8x512xf32> to vector<8x512xf32>
    %104 = arith.mulf %82, %4 : vector<8x512xf32>
    %105 = arith.addf %103, %104 : vector<8x512xf32>
    %c0_88 = arith.constant 0 : index
    %c2_89 = arith.constant 2 : index
    %c0_90 = arith.constant 0 : index
    %c0_91 = arith.constant 0 : index
    %106 = vector.load %arg10[%c0_88, %c2_89, %c0_90, %c0_91] : memref<1x6x8x512xf32, #tpu.memory_space<vmem>>, vector<1x1x8x512xf32>
    %107 = vector.shape_cast %106 : vector<1x1x8x512xf32> to vector<8x512xf32>
    %108 = vector.shape_cast %105 : vector<8x512xf32> to vector<1x1x8x512xf32>
    tpu.vector_store %arg10[%c0_88, %c2_89, %c0_90, %c0_91], %108 {strides = array<i32>} : memref<1x6x8x512xf32, #tpu.memory_space<vmem>>, vector<1x1x8x512xf32>,
    %c0_92 = arith.constant 0 : index
    %c2_93 = arith.constant 2 : index
    %c0_94 = arith.constant 0 : index
    %c0_95 = arith.constant 0 : index
    %109 = vector.load %arg11[%c0_92, %c2_93, %c0_94, %c0_95] : memref<1x6x8x512xf32, #tpu.memory_space<vmem>>, vector<1x1x8x512xf32>
    %110 = vector.shape_cast %109 : vector<1x1x8x512xf32> to vector<8x512xf32>
    %111 = arith.addf %110, %82 : vector<8x512xf32>
    %c0_96 = arith.constant 0 : index
    %c2_97 = arith.constant 2 : index
    %c0_98 = arith.constant 0 : index
    %c0_99 = arith.constant 0 : index
    %112 = vector.load %arg11[%c0_96, %c2_97, %c0_98, %c0_99] : memref<1x6x8x512xf32, #tpu.memory_space<vmem>>, vector<1x1x8x512xf32>
    %113 = vector.shape_cast %112 : vector<1x1x8x512xf32> to vector<8x512xf32>
    %114 = vector.shape_cast %111 : vector<8x512xf32> to vector<1x1x8x512xf32>
    tpu.vector_store %arg11[%c0_96, %c2_97, %c0_98, %c0_99], %114 {strides = array<i32>} : memref<1x6x8x512xf32, #tpu.memory_space<vmem>>, vector<1x1x8x512xf32>,
    %c0_100 = arith.constant 0 : index
    %c0_101 = arith.constant 0 : index
    %c0_102 = arith.constant 0 : index
    %115 = vector.load %arg5[%c0_100, %c0_101, %c0_102] : memref<1x8x512xf32, #tpu.memory_space<vmem>>, vector<1x8x512xf32>
    %116 = vector.shape_cast %115 : vector<1x8x512xf32> to vector<8x512xf32>
    %117 = math.log %116 : vector<8x512xf32>
    %cst_103 = arith.constant -1.000000e+02 : f32
    %118 = vector.broadcast %cst_103 : f32 to vector<8x512xf32>
    %119 = arith.maximumf %117, %118 : vector<8x512xf32>
    %cst_104 = arith.constant 1.000000e+00 : f32
    %120 = vector.broadcast %cst_104 : f32 to vector<8x512xf32>
    %121 = arith.subf %120, %116 : vector<8x512xf32>
    %122 = math.log %121 : vector<8x512xf32>
    %cst_105 = arith.constant -1.000000e+02 : f32
    %123 = vector.broadcast %cst_105 : f32 to vector<8x512xf32>
    %124 = arith.maximumf %122, %123 : vector<8x512xf32>
    %125 = arith.mulf %4, %119 : vector<8x512xf32>
    %126 = arith.mulf %12, %124 : vector<8x512xf32>
    %127 = arith.addf %125, %126 : vector<8x512xf32>
    %cst_106 = arith.constant 0.000000e+00 : f32
    %128 = vector.broadcast %cst_106 : f32 to vector<8x512xf32>
    %129 = arith.subf %128, %127 : vector<8x512xf32>
    %c0_107 = arith.constant 0 : index
    %c3 = arith.constant 3 : index
    %c0_108 = arith.constant 0 : index
    %c0_109 = arith.constant 0 : index
    %130 = vector.load %arg9[%c0_107, %c3, %c0_108, %c0_109] : memref<1x6x8x512xf32, #tpu.memory_space<vmem>>, vector<1x1x8x512xf32>
    %131 = vector.shape_cast %130 : vector<1x1x8x512xf32> to vector<8x512xf32>
    %132 = arith.addf %131, %129 : vector<8x512xf32>
    %c0_110 = arith.constant 0 : index
    %c3_111 = arith.constant 3 : index
    %c0_112 = arith.constant 0 : index
    %c0_113 = arith.constant 0 : index
    %133 = vector.load %arg9[%c0_110, %c3_111, %c0_112, %c0_113] : memref<1x6x8x512xf32, #tpu.memory_space<vmem>>, vector<1x1x8x512xf32>
    %134 = vector.shape_cast %133 : vector<1x1x8x512xf32> to vector<8x512xf32>
    %135 = vector.shape_cast %132 : vector<8x512xf32> to vector<1x1x8x512xf32>
    tpu.vector_store %arg9[%c0_110, %c3_111, %c0_112, %c0_113], %135 {strides = array<i32>} : memref<1x6x8x512xf32, #tpu.memory_space<vmem>>, vector<1x1x8x512xf32>,
    %c0_114 = arith.constant 0 : index
    %c3_115 = arith.constant 3 : index
    %c0_116 = arith.constant 0 : index
    %c0_117 = arith.constant 0 : index
    %136 = vector.load %arg10[%c0_114, %c3_115, %c0_116, %c0_117] : memref<1x6x8x512xf32, #tpu.memory_space<vmem>>, vector<1x1x8x512xf32>
    %137 = vector.shape_cast %136 : vector<1x1x8x512xf32> to vector<8x512xf32>
    %138 = arith.mulf %116, %4 : vector<8x512xf32>
    %139 = arith.addf %137, %138 : vector<8x512xf32>
    %c0_118 = arith.constant 0 : index
    %c3_119 = arith.constant 3 : index
    %c0_120 = arith.constant 0 : index
    %c0_121 = arith.constant 0 : index
    %140 = vector.load %arg10[%c0_118, %c3_119, %c0_120, %c0_121] : memref<1x6x8x512xf32, #tpu.memory_space<vmem>>, vector<1x1x8x512xf32>
    %141 = vector.shape_cast %140 : vector<1x1x8x512xf32> to vector<8x512xf32>
    %142 = vector.shape_cast %139 : vector<8x512xf32> to vector<1x1x8x512xf32>
    tpu.vector_store %arg10[%c0_118, %c3_119, %c0_120, %c0_121], %142 {strides = array<i32>} : memref<1x6x8x512xf32, #tpu.memory_space<vmem>>, vector<1x1x8x512xf32>,
    %c0_122 = arith.constant 0 : index
    %c3_123 = arith.constant 3 : index
    %c0_124 = arith.constant 0 : index
    %c0_125 = arith.constant 0 : index
    %143 = vector.load %arg11[%c0_122, %c3_123, %c0_124, %c0_125] : memref<1x6x8x512xf32, #tpu.memory_space<vmem>>, vector<1x1x8x512xf32>
    %144 = vector.shape_cast %143 : vector<1x1x8x512xf32> to vector<8x512xf32>
    %145 = arith.addf %144, %116 : vector<8x512xf32>
    %c0_126 = arith.constant 0 : index
    %c3_127 = arith.constant 3 : index
    %c0_128 = arith.constant 0 : index
    %c0_129 = arith.constant 0 : index
    %146 = vector.load %arg11[%c0_126, %c3_127, %c0_128, %c0_129] : memref<1x6x8x512xf32, #tpu.memory_space<vmem>>, vector<1x1x8x512xf32>
    %147 = vector.shape_cast %146 : vector<1x1x8x512xf32> to vector<8x512xf32>
    %148 = vector.shape_cast %145 : vector<8x512xf32> to vector<1x1x8x512xf32>
    tpu.vector_store %arg11[%c0_126, %c3_127, %c0_128, %c0_129], %148 {strides = array<i32>} : memref<1x6x8x512xf32, #tpu.memory_space<vmem>>, vector<1x1x8x512xf32>,
    %c0_130 = arith.constant 0 : index
    %c0_131 = arith.constant 0 : index
    %c0_132 = arith.constant 0 : index
    %149 = vector.load %arg6[%c0_130, %c0_131, %c0_132] : memref<1x8x512xf32, #tpu.memory_space<vmem>>, vector<1x8x512xf32>
    %150 = vector.shape_cast %149 : vector<1x8x512xf32> to vector<8x512xf32>
    %151 = math.log %150 : vector<8x512xf32>
    %cst_133 = arith.constant -1.000000e+02 : f32
    %152 = vector.broadcast %cst_133 : f32 to vector<8x512xf32>
    %153 = arith.maximumf %151, %152 : vector<8x512xf32>
    %cst_134 = arith.constant 1.000000e+00 : f32
    %154 = vector.broadcast %cst_134 : f32 to vector<8x512xf32>
    %155 = arith.subf %154, %150 : vector<8x512xf32>
    %156 = math.log %155 : vector<8x512xf32>
    %cst_135 = arith.constant -1.000000e+02 : f32
    %157 = vector.broadcast %cst_135 : f32 to vector<8x512xf32>
    %158 = arith.maximumf %156, %157 : vector<8x512xf32>
    %159 = arith.mulf %4, %153 : vector<8x512xf32>
    %160 = arith.mulf %12, %158 : vector<8x512xf32>
    %161 = arith.addf %159, %160 : vector<8x512xf32>
    %cst_136 = arith.constant 0.000000e+00 : f32
    %162 = vector.broadcast %cst_136 : f32 to vector<8x512xf32>
    %163 = arith.subf %162, %161 : vector<8x512xf32>
    %c0_137 = arith.constant 0 : index
    %c4 = arith.constant 4 : index
    %c0_138 = arith.constant 0 : index
    %c0_139 = arith.constant 0 : index
    %164 = vector.load %arg9[%c0_137, %c4, %c0_138, %c0_139] : memref<1x6x8x512xf32, #tpu.memory_space<vmem>>, vector<1x1x8x512xf32>
    %165 = vector.shape_cast %164 : vector<1x1x8x512xf32> to vector<8x512xf32>
    %166 = arith.addf %165, %163 : vector<8x512xf32>
    %c0_140 = arith.constant 0 : index
    %c4_141 = arith.constant 4 : index
    %c0_142 = arith.constant 0 : index
    %c0_143 = arith.constant 0 : index
    %167 = vector.load %arg9[%c0_140, %c4_141, %c0_142, %c0_143] : memref<1x6x8x512xf32, #tpu.memory_space<vmem>>, vector<1x1x8x512xf32>
    %168 = vector.shape_cast %167 : vector<1x1x8x512xf32> to vector<8x512xf32>
    %169 = vector.shape_cast %166 : vector<8x512xf32> to vector<1x1x8x512xf32>
    tpu.vector_store %arg9[%c0_140, %c4_141, %c0_142, %c0_143], %169 {strides = array<i32>} : memref<1x6x8x512xf32, #tpu.memory_space<vmem>>, vector<1x1x8x512xf32>,
    %c0_144 = arith.constant 0 : index
    %c4_145 = arith.constant 4 : index
    %c0_146 = arith.constant 0 : index
    %c0_147 = arith.constant 0 : index
    %170 = vector.load %arg10[%c0_144, %c4_145, %c0_146, %c0_147] : memref<1x6x8x512xf32, #tpu.memory_space<vmem>>, vector<1x1x8x512xf32>
    %171 = vector.shape_cast %170 : vector<1x1x8x512xf32> to vector<8x512xf32>
    %172 = arith.mulf %150, %4 : vector<8x512xf32>
    %173 = arith.addf %171, %172 : vector<8x512xf32>
    %c0_148 = arith.constant 0 : index
    %c4_149 = arith.constant 4 : index
    %c0_150 = arith.constant 0 : index
    %c0_151 = arith.constant 0 : index
    %174 = vector.load %arg10[%c0_148, %c4_149, %c0_150, %c0_151] : memref<1x6x8x512xf32, #tpu.memory_space<vmem>>, vector<1x1x8x512xf32>
    %175 = vector.shape_cast %174 : vector<1x1x8x512xf32> to vector<8x512xf32>
    %176 = vector.shape_cast %173 : vector<8x512xf32> to vector<1x1x8x512xf32>
    tpu.vector_store %arg10[%c0_148, %c4_149, %c0_150, %c0_151], %176 {strides = array<i32>} : memref<1x6x8x512xf32, #tpu.memory_space<vmem>>, vector<1x1x8x512xf32>,
    %c0_152 = arith.constant 0 : index
    %c4_153 = arith.constant 4 : index
    %c0_154 = arith.constant 0 : index
    %c0_155 = arith.constant 0 : index
    %177 = vector.load %arg11[%c0_152, %c4_153, %c0_154, %c0_155] : memref<1x6x8x512xf32, #tpu.memory_space<vmem>>, vector<1x1x8x512xf32>
    %178 = vector.shape_cast %177 : vector<1x1x8x512xf32> to vector<8x512xf32>
    %179 = arith.addf %178, %150 : vector<8x512xf32>
    %c0_156 = arith.constant 0 : index
    %c4_157 = arith.constant 4 : index
    %c0_158 = arith.constant 0 : index
    %c0_159 = arith.constant 0 : index
    %180 = vector.load %arg11[%c0_156, %c4_157, %c0_158, %c0_159] : memref<1x6x8x512xf32, #tpu.memory_space<vmem>>, vector<1x1x8x512xf32>
    %181 = vector.shape_cast %180 : vector<1x1x8x512xf32> to vector<8x512xf32>
    %182 = vector.shape_cast %179 : vector<8x512xf32> to vector<1x1x8x512xf32>
    tpu.vector_store %arg11[%c0_156, %c4_157, %c0_158, %c0_159], %182 {strides = array<i32>} : memref<1x6x8x512xf32, #tpu.memory_space<vmem>>, vector<1x1x8x512xf32>,
    %c0_160 = arith.constant 0 : index
    %c0_161 = arith.constant 0 : index
    %c0_162 = arith.constant 0 : index
    %183 = vector.load %arg7[%c0_160, %c0_161, %c0_162] : memref<1x8x512xf32, #tpu.memory_space<vmem>>, vector<1x8x512xf32>
    %184 = vector.shape_cast %183 : vector<1x8x512xf32> to vector<8x512xf32>
    %185 = math.log %184 : vector<8x512xf32>
    %cst_163 = arith.constant -1.000000e+02 : f32
    %186 = vector.broadcast %cst_163 : f32 to vector<8x512xf32>
    %187 = arith.maximumf %185, %186 : vector<8x512xf32>
    %cst_164 = arith.constant 1.000000e+00 : f32
    %188 = vector.broadcast %cst_164 : f32 to vector<8x512xf32>
    %189 = arith.subf %188, %184 : vector<8x512xf32>
    %190 = math.log %189 : vector<8x512xf32>
    %cst_165 = arith.constant -1.000000e+02 : f32
    %191 = vector.broadcast %cst_165 : f32 to vector<8x512xf32>
    %192 = arith.maximumf %190, %191 : vector<8x512xf32>
    %193 = arith.mulf %4, %187 : vector<8x512xf32>
    %194 = arith.mulf %12, %192 : vector<8x512xf32>
    %195 = arith.addf %193, %194 : vector<8x512xf32>
    %cst_166 = arith.constant 0.000000e+00 : f32
    %196 = vector.broadcast %cst_166 : f32 to vector<8x512xf32>
    %197 = arith.subf %196, %195 : vector<8x512xf32>
    %c0_167 = arith.constant 0 : index
    %c5 = arith.constant 5 : index
    %c0_168 = arith.constant 0 : index
    %c0_169 = arith.constant 0 : index
    %198 = vector.load %arg9[%c0_167, %c5, %c0_168, %c0_169] : memref<1x6x8x512xf32, #tpu.memory_space<vmem>>, vector<1x1x8x512xf32>
    %199 = vector.shape_cast %198 : vector<1x1x8x512xf32> to vector<8x512xf32>
    %200 = arith.addf %199, %197 : vector<8x512xf32>
    %c0_170 = arith.constant 0 : index
    %c5_171 = arith.constant 5 : index
    %c0_172 = arith.constant 0 : index
    %c0_173 = arith.constant 0 : index
    %201 = vector.load %arg9[%c0_170, %c5_171, %c0_172, %c0_173] : memref<1x6x8x512xf32, #tpu.memory_space<vmem>>, vector<1x1x8x512xf32>
    %202 = vector.shape_cast %201 : vector<1x1x8x512xf32> to vector<8x512xf32>
    %203 = vector.shape_cast %200 : vector<8x512xf32> to vector<1x1x8x512xf32>
    tpu.vector_store %arg9[%c0_170, %c5_171, %c0_172, %c0_173], %203 {strides = array<i32>} : memref<1x6x8x512xf32, #tpu.memory_space<vmem>>, vector<1x1x8x512xf32>,
    %c0_174 = arith.constant 0 : index
    %c5_175 = arith.constant 5 : index
    %c0_176 = arith.constant 0 : index
    %c0_177 = arith.constant 0 : index
    %204 = vector.load %arg10[%c0_174, %c5_175, %c0_176, %c0_177] : memref<1x6x8x512xf32, #tpu.memory_space<vmem>>, vector<1x1x8x512xf32>
    %205 = vector.shape_cast %204 : vector<1x1x8x512xf32> to vector<8x512xf32>
    %206 = arith.mulf %184, %4 : vector<8x512xf32>
    %207 = arith.addf %205, %206 : vector<8x512xf32>
    %c0_178 = arith.constant 0 : index
    %c5_179 = arith.constant 5 : index
    %c0_180 = arith.constant 0 : index
    %c0_181 = arith.constant 0 : index
    %208 = vector.load %arg10[%c0_178, %c5_179, %c0_180, %c0_181] : memref<1x6x8x512xf32, #tpu.memory_space<vmem>>, vector<1x1x8x512xf32>
    %209 = vector.shape_cast %208 : vector<1x1x8x512xf32> to vector<8x512xf32>
    %210 = vector.shape_cast %207 : vector<8x512xf32> to vector<1x1x8x512xf32>
    tpu.vector_store %arg10[%c0_178, %c5_179, %c0_180, %c0_181], %210 {strides = array<i32>} : memref<1x6x8x512xf32, #tpu.memory_space<vmem>>, vector<1x1x8x512xf32>,
    %c0_182 = arith.constant 0 : index
    %c5_183 = arith.constant 5 : index
    %c0_184 = arith.constant 0 : index
    %c0_185 = arith.constant 0 : index
    %211 = vector.load %arg11[%c0_182, %c5_183, %c0_184, %c0_185] : memref<1x6x8x512xf32, #tpu.memory_space<vmem>>, vector<1x1x8x512xf32>
    %212 = vector.shape_cast %211 : vector<1x1x8x512xf32> to vector<8x512xf32>
    %213 = arith.addf %212, %184 : vector<8x512xf32>
    %c0_186 = arith.constant 0 : index
    %c5_187 = arith.constant 5 : index
    %c0_188 = arith.constant 0 : index
    %c0_189 = arith.constant 0 : index
    %214 = vector.load %arg11[%c0_186, %c5_187, %c0_188, %c0_189] : memref<1x6x8x512xf32, #tpu.memory_space<vmem>>, vector<1x1x8x512xf32>
    %215 = vector.shape_cast %214 : vector<1x1x8x512xf32> to vector<8x512xf32>
    %216 = vector.shape_cast %213 : vector<8x512xf32> to vector<1x1x8x512xf32>
    tpu.vector_store %arg11[%c0_186, %c5_187, %c0_188, %c0_189], %216 {strides = array<i32>} : memref<1x6x8x512xf32, #tpu.memory_space<vmem>>, vector<1x1x8x512xf32>,
    return
  }
  func.func @transform_0(%arg0: i32, %arg1: i32) -> (i32, i32, i32) {
    %c0_i32 = arith.constant 0 : i32
    %c0_i32_0 = arith.constant 0 : i32
    return %arg0, %arg1, %c0_i32 : i32, i32, i32
  }
  func.func @transform_1(%arg0: i32, %arg1: i32) -> (i32, i32, i32) {
    %c0_i32 = arith.constant 0 : i32
    %c0_i32_0 = arith.constant 0 : i32
    return %arg0, %arg1, %c0_i32 : i32, i32, i32
  }
  func.func @transform_2(%arg0: i32, %arg1: i32) -> (i32, i32, i32) {
    %c0_i32 = arith.constant 0 : i32
    %c0_i32_0 = arith.constant 0 : i32
    return %arg0, %arg1, %c0_i32 : i32, i32, i32
  }
  func.func @transform_3(%arg0: i32, %arg1: i32) -> (i32, i32, i32) {
    %c0_i32 = arith.constant 0 : i32
    %c0_i32_0 = arith.constant 0 : i32
    return %arg0, %arg1, %c0_i32 : i32, i32, i32
  }
  func.func @transform_4(%arg0: i32, %arg1: i32) -> (i32, i32, i32) {
    %c0_i32 = arith.constant 0 : i32
    %c0_i32_0 = arith.constant 0 : i32
    return %arg0, %arg1, %c0_i32 : i32, i32, i32
  }
  func.func @transform_5(%arg0: i32, %arg1: i32) -> (i32, i32, i32) {
    %c0_i32 = arith.constant 0 : i32
    %c0_i32_0 = arith.constant 0 : i32
    return %arg0, %arg1, %c0_i32 : i32, i32, i32
  }
  func.func @transform_6(%arg0: i32, %arg1: i32) -> (i32, i32, i32) {
    %c0_i32 = arith.constant 0 : i32
    %c0_i32_0 = arith.constant 0 : i32
    return %arg0, %arg1, %c0_i32 : i32, i32, i32
  }
  func.func @transform_7(%arg0: i32, %arg1: i32) -> (i32, i32, i32, i32) {
    %c0_i32 = arith.constant 0 : i32
    %c0_i32_0 = arith.constant 0 : i32
    %c0_i32_1 = arith.constant 0 : i32
    %c0_i32_2 = arith.constant 0 : i32
    return %arg0, %c0_i32, %c0_i32_0, %c0_i32_1 : i32, i32, i32, i32
  }
  func.func @transform_8(%arg0: i32, %arg1: i32) -> (i32, i32, i32, i32) {
    %c0_i32 = arith.constant 0 : i32
    %c0_i32_0 = arith.constant 0 : i32
    %c0_i32_1 = arith.constant 0 : i32
    %c0_i32_2 = arith.constant 0 : i32
    return %arg0, %c0_i32, %c0_i32_0, %c0_i32_1 : i32, i32, i32, i32
  }
  func.func @transform_9(%arg0: i32, %arg1: i32) -> (i32, i32, i32, i32) {
    %c0_i32 = arith.constant 0 : i32
    %c0_i32_0 = arith.constant 0 : i32
    %c0_i32_1 = arith.constant 0 : i32
    %c0_i32_2 = arith.constant 0 : i32
    return %arg0, %c0_i32, %c0_i32_0, %c0_i32_1 : i32, i32, i32, i32
  }
  func.func @transform_10(%arg0: i32, %arg1: i32) -> (i32, i32, i32) {
    %c0_i32 = arith.constant 0 : i32
    %c0_i32_0 = arith.constant 0 : i32
    %c0_i32_1 = arith.constant 0 : i32
    return %arg0, %c0_i32, %c0_i32_0 : i32, i32, i32
  }
}

</mosaic_0001>

<bundles_post_ra>
// kernel: tpu_custom_call.1
= control target key start
LH: loop header
LB: loop body
LE: loop exit
PB: predicated region body
PF: predicated region fallthrough
CT: control target
= control target key end

     0   :  { %s3442_s0 = inlined_call_operand.hbm [shape: f32[2,8,512], index: 0, kind: input, shape index: {}]   ;;  %s3443_s1 = inlined_call_operand.hbm [shape: f32[2,8,512], index: 1, kind: input, shape index: {}]   ;;  %s3444_s2 = inlined_call_operand.hbm [shape: f32[2,8,512], index: 2, kind: input, shape index: {}]   ;;  %s3445_s3 = inlined_call_operand.hbm [shape: f32[2,8,512], index: 3, kind: input, shape index: {}]   ;;  %s3446_s4 = inlined_call_operand.hbm [shape: f32[2,8,512], index: 4, kind: input, shape index: {}]   ;;  %s3447_s5 = inlined_call_operand.hbm [shape: f32[2,8,512], index: 5, kind: input, shape index: {}]   ;;  %s3448_s6 = inlined_call_operand.hbm [shape: f32[2,8,512], index: 6, kind: input, shape index: {}]   ;;  %s3449_s7 = inlined_call_operand.hbm [shape: f32[2,6,8,512], index: 7, kind: output, shape index: {0}]   ;;  %s3450_s8 = inlined_call_operand.hbm [shape: f32[2,6,8,512], index: 8, kind: output, shape index: {1}]   ;;  %s3451_s9 = inlined_call_operand.hbm [shape: f32[2,6,8,512], index: 9, kind: output, shape index: {2}]   ;;  %s3452_s10 = inlined_call_operand.hbm [shape: f32[2,8,512], index: 10, kind: output, shape index: {3}]  }
   0x1   :  { %3469 = sst [smem:[#allocation34_spill]] %s3442_s0 }
   0x2   :  { %3470 = sst [smem:[#allocation35_spill]] %s3443_s1 }
   0x3   :  { %3471 = sst [smem:[#allocation36_spill]] %s3445_s3 }
   0x4   :  { %3472 = sst [smem:[#allocation37_spill]] %s3447_s5 }
   0x5   :  { %3473 = sst [smem:[#allocation38_spill]] %s3449_s7 }
   0x6   :  { %3474 = sst [smem:[#allocation39_spill]] %s3451_s9 }
   0x7   :  { %16 = vsyncpa [#allocation3], 0 }
   0x8   :  { %18 = vsyncpa [#allocation3 + $0x1], 0 }
   0x9   :  { %19 = vsyncpa [#allocation6], 0 }
   0xa   :  { %21 = vsyncpa [#allocation6 + $0x1], 0 }
   0xb   :  { %22 = vsyncpa [#allocation9], 0 }
   0xc   :  { %24 = vsyncpa [#allocation9 + $0x1], 0 }
   0xd   :  { %25 = vsyncpa [#allocation12], 0 }
   0xe   :  { %27 = vsyncpa [#allocation12 + $0x1], 0 }
   0xf   :  { %28 = vsyncpa [#allocation4], 0 }
  0x10   :  { %30 = vsyncpa [#allocation4 + $0x1], 0 }
  0x11   :  { %31 = vsyncpa [#allocation16], 0 }
  0x12   :  { %33 = vsyncpa [#allocation16 + $0x1], 0 }
  0x13   :  { %34 = vsyncpa [#allocation19], 0 }
  0x14   :  { %36 = vsyncpa [#allocation19 + $0x1], 0  ;;  %s2553_s13 = smov 0   ;;  %s2555_s14 = smov 0  }
  0x15   :  { %s2557_s15 = smov 0   ;;  %s2559_s16 = smov 0  }
  0x16   :  { %s2561_s17 = smov 0   ;;  %s2563_s18 = smov 0  }
  0x17 LB: > { %3475 = sst [smem:[#allocation27_spill]] %s2463_s13  ;;  %s2584_s19 = sadd.s32 4294967295, %s2483_s18   ;;  %s2483_s18 = sphi %s2563_s18, %s42_s18   ;;  %s2479_s17 = sphi %s2561_s17, %s3521_s17   ;;  %s2475_s16 = sphi %s2559_s16, %s3520_s16   ;;  %s2471_s15 = sphi %s2557_s15, %s3519_s15   ;;  %s2467_s14 = sphi %s2555_s14, %s3523_s14   ;;  %s2463_s13 = sphi %s2553_s13, %s3522_s13  }
  0x18   : > { %3476 = sst [smem:[#allocation28_spill]] %s2471_s15  ;;  %s3453_s20 = sadd.s32 4294967294, %s2483_s18  }
  0x19   : > { %3477 = sst [smem:[#allocation29_spill]] %s2479_s17  ;;  %s54_s21 = sadd.s32 1, %s2479_s17 }
  0x1a   : > { %3478 = sst [smem:[#allocation30_spill]] %s2483_s18  ;;  %s63_s22 = sadd.s32 1, %s2471_s15 }
  0x1b   : > { %p56_p0 = scmp.ge.s32.totalorder %s54_s21, 2  ;;  %p70_p1 = scmp.ne.s32.totalorder %s2471_s15, %s2467_s14 }
  0x1c   : > { %p71_p2 = scmp.eq.s32.totalorder %s2483_s18, 0  ;;  %p76_p3 = scmp.ne.s32.totalorder %s2467_s14, %s2463_s13 }
  0x1d   : > { %s3525_s21 = smov (%p56_p0, %s54_s21), 0  ;;  %p77_p5 = scmp.eq.s32.totalorder %s2584_s19, 0 }
  0x1e   : > { %3479 = sst [smem:[#allocation31_spill]] %s3525_s21  ;;  %p2596_p4 = por %p71_p2, %p70_p1 }
  0x1f   : > { %s58_s24 = ssub.s32 %s2479_s17, %s3525_s21  ;;  %p268_p6 = scmp.eq.s32.totalorder %s2584_s19, 1 }
  0x20   : > { %p61_p7 = scmp.eq.s32.totalorder %s58_s24, 0  ;;  %p2604_p8 = por %p77_p5, %p76_p3 }
  0x21   : > { %p2608_p9 = por %p268_p6, %p70_p1  ;;  %p274_p10 = scmp.eq.s32.totalorder %s3453_s20, 1 }
  0x22   : > { %s3481_s25 = scalar_select %p2604_p8, 1, 0 }
  0x23   : > { %s3482_s26 = scalar_select %p2608_p9, 1, 0 }
  0x24   : > { %s2615_s27 = scalar_select %p61_p7, %s2471_s15, %s63_s22  }
  0x25   : > { %p2617_p11 = por %p274_p10, %p76_p3  ;;  %p1936_p13 = scmp.lt.s32.totalorder %s2483_s18, 2 }
  0x26   : > { %3483 = sst [smem:[#allocation32_spill]] %s2615_s27  ;;  %s3455_s29 = sand.u32 1, %s2471_s15  }
  0x27   : > { %s3484_s28 = scalar_select %p2617_p11, 1, 0 }
  0x28   : > { %s2626_s30 = sshll.u32 %s3455_s29, 5  ;;  %s2629_s11 = sshll.u32 %s2479_s17, 9 }
  0x29   : > { %3485 = sst [smem:[#allocation33_spill]] %s3484_s28  ;;  %p2633_p0 = pnand %p1936_p13, %p2596_p4 }
  0x2a   : > { %s2638_s22 = sand.u32 1, %s2483_s18   ;;  %s3487_s1 = sld [smem:[#allocation35_spill]] }
  0x2b   : > { %s3486_s12 = scalar_select %p2633_p0, 1, 0 }
  0x2c   : > { %s397_s29 = scalar_lea.vmem [#allocation5], %s2626_s30  ;;  %p2656_p4 = pneg %p2633_p0 }
  0x2d   : > { %s407_s23 = sshll.u32 %s397_s29, 4  ;;  %s2648_s23 = int_to_ptr.vmem [resolvable:$true] %s407_s23 }
  0x30   : > { %s2644_s21 = scalar_lea.hbm %s3487_s1, %s2629_s11  ;;  %s2092_s29 = scalar_lea.hbm %s3487_s1, 1024 }
  0x31   : > { %s2087_s27 = scalar_lea.hbm %s2644_s21, 512  ;;  %p2093_p7 = scmp.lt.u32.totalorder %s2644_s21, %s3487_s1 }
  0x32   : > { %p2088_p3 = scmp.ne.s32.totalorder %s2644_s21, %s2087_s27  ;;  %p2094_p10 = scmp.lt.u32.totalorder %s2092_s29, %s2087_s27 }
  0x33   : > { %p2096_p12 = scmp.lt.u32.totalorder %s2087_s27, %s2644_s21 }
  0x34   : > { %p2090_p5 = pnand %p2656_p4, %p2088_p3  ;;  %p2095_p13 = por %p2094_p10, %p2093_p7 }
  0x36   : > { %p2091_p6 = pneg %p2090_p5  ;;  %p2097_p1 = por %p2096_p12, %p2095_p13 }
  0x38   : > { %p2098_p2 = pnand %p2097_p1, %p2091_p6 }
  0x3a   : > { %2101 = shalt.err (!%p2098_p2)
}
  0x3b   : > { %s2102_s17 = scalar_lea.vmem %s2648_s23, 512  ;;  %s2485_s20 = smov [#allocation5]  }
  0x3c   : > { %p2103_p3 = scmp.ne.s32.totalorder %s2648_s23, %s2102_s17  ;;  %s2107_s24 = sshll.u32 %s2485_s20, 4  ;;  %s2108_s24 = int_to_ptr.vmem [resolvable:$false] %s2107_s24 }
  0x3d   : > { %s2109_s7 = scalar_lea.vmem %s2108_s24, 1024  ;;  %p2110_p9 = scmp.lt.s32.totalorder %s2648_s23, %s2108_s24 }
  0x3e   : > { %p2105_p5 = pnand %p2103_p3, %p2656_p4  ;;  %p2111_p8 = scmp.lt.s32.totalorder %s2109_s7, %s2102_s17 }
  0x40   : > { %p2106_p11 = pneg %p2105_p5  ;;  %p2112_p7 = por %p2111_p8, %p2110_p9 }
  0x42   : > { %p2113_p10 = pnand %p2112_p7, %p2106_p11 }
  0x44   : > { %2116 = shalt.err (!%p2113_p10)
}
  0x45   : > { %s3489_s13 = scalar_lea.sflag [#allocation6], %s2638_s22  ;;  %p3490_p12 = scmp.lt.s32.totalorder %s2483_s18, 3 }
  0x46   : > { %1907 = dma.hbm_to_vmem [thread:$0]  (!%p2633_p0), %s2644_s21, 512, %s2648_s23, %s3489_s13  }
  0x47   : > { %p3491_p1 = scmp.ge.s32.totalorder %s2483_s18, 1  ;;  %s3493_s3 = sld [smem:[#allocation36_spill]] }
  0x48   : > { %s439_s24 = scalar_lea.vmem [#allocation8], %s2626_s30 }
  0x49   : > { %p2685_p2 = pnand %p3491_p1, %p3490_p12  ;;  %s449_s7 = sshll.u32 %s439_s24, 4  ;;  %s450_s7 = int_to_ptr.vmem [resolvable:$true] %s449_s7 }
  0x4b   : > { %s3492_s17 = scalar_select %p2685_p2, 1, 0 }
  0x4d   : > { %s2693_s20 = scalar_lea.hbm %s3493_s3, %s2629_s11  ;;  %s2122_s18 = scalar_lea.hbm %s3493_s3, 1024 }
  0x4e   : > { %s2117_s21 = scalar_lea.hbm %s2693_s20, 512  ;;  %p2123_p6 = scmp.lt.u32.totalorder %s2693_s20, %s3493_s3 }
  0x4f   : > { %p2118_p8 = scmp.ne.s32.totalorder %s2693_s20, %s2117_s21  ;;  %p2124_p13 = scmp.lt.u32.totalorder %s2122_s18, %s2117_s21 }
  0x50   : > { %p2126_p5 = scmp.lt.u32.totalorder %s2117_s21, %s2693_s20 }
  0x51   : > { %p2120_p9 = pnand %p2118_p8, %p2656_p4  ;;  %p2125_p3 = por %p2124_p13, %p2123_p6 }
  0x53   : > { %p2121_p11 = pneg %p2120_p9  ;;  %p2127_p7 = por %p2126_p5, %p2125_p3 }
  0x55   : > { %p2128_p10 = pnand %p2127_p7, %p2121_p11 }
  0x57   : > { %2131 = shalt.err (!%p2128_p10)
}
  0x58   : > { %s2132_s24 = scalar_lea.vmem %s450_s7, 512  ;;  %s2486_s1 = smov [#allocation8]  }
  0x59   : > { %p2133_p12 = scmp.ne.s32.totalorder %s450_s7, %s2132_s24  ;;  %s2137_s9 = sshll.u32 %s2486_s1, 4  ;;  %s2138_s9 = int_to_ptr.vmem [resolvable:$false] %s2137_s9 }
  0x5a   : > { %s2139_s23 = scalar_lea.vmem %s2138_s9, 1024  ;;  %p2140_p9 = scmp.lt.s32.totalorder %s450_s7, %s2138_s9 }
  0x5b   : > { %p2135_p1 = pnand %p2133_p12, %p2656_p4  ;;  %p2141_p2 = scmp.lt.s32.totalorder %s2139_s23, %s2132_s24 }
  0x5d   : > { %p2136_p8 = pneg %p2135_p1  ;;  %p2142_p0 = por %p2141_p2, %p2140_p9 }
  0x5f   : > { %p2143_p6 = pnand %p2142_p0, %p2136_p8 }
  0x61   : > { %2146 = shalt.err (!%p2143_p6)
}
  0x62   : > { %p3494_p13 = scmp.ne.s32.totalorder %s3486_s12, 0  ;;  %s3495_s18 = scalar_lea.sflag [#allocation9], %s2638_s22 }
  0x63   : > { %s3496_s5 = sld [smem:[#allocation37_spill]]  ;;  %s481_s9 = scalar_lea.vmem [#allocation11], %s2626_s30 }
  0x64   : > { %1913 = dma.hbm_to_vmem [thread:$0]  (!%p3494_p13), %s2693_s20, 512, %s450_s7, %s3495_s18  }
  0x65   : > { %s491_s27 = sshll.u32 %s481_s9, 4  ;;  %s492_s27 = int_to_ptr.vmem [resolvable:$true] %s491_s27 }
  0x69   : > { %s2720_s1 = scalar_lea.hbm %s3496_s5, %s2629_s11  ;;  %s2152_s7 = scalar_lea.hbm %s3496_s5, 1024 }
  0x6a   : > { %s2147_s24 = scalar_lea.hbm %s2720_s1, 512  ;;  %p2153_p3 = scmp.lt.u32.totalorder %s2720_s1, %s3496_s5 }
  0x6b   : > { %p2148_p0 = scmp.ne.s32.totalorder %s2720_s1, %s2147_s24  ;;  %p2154_p5 = scmp.lt.u32.totalorder %s2152_s7, %s2147_s24 }
  0x6c   : > { %p2156_p10 = scmp.lt.u32.totalorder %s2147_s24, %s2720_s1 }
  0x6d   : > { %p2150_p2 = pnand %p2148_p0, %p2656_p4  ;;  %p2155_p7 = por %p2154_p5, %p2153_p3 }
  0x6f   : > { %p2151_p11 = pneg %p2150_p2  ;;  %p2157_p12 = por %p2156_p10, %p2155_p7 }
  0x71   : > { %p2158_p1 = pnand %p2157_p12, %p2151_p11 }
  0x73   : > { %2161 = shalt.err (!%p2158_p1)
}
  0x74   : > { %s2162_s13 = scalar_lea.vmem %s492_s27, 512  ;;  %s2487_s9 = smov [#allocation11]  }
  0x75   : > { %p2163_p8 = scmp.ne.s32.totalorder %s492_s27, %s2162_s13  ;;  %s2167_s29 = sshll.u32 %s2487_s9, 4  ;;  %s2168_s29 = int_to_ptr.vmem [resolvable:$false] %s2167_s29 }
  0x76   : > { %s2169_s23 = scalar_lea.vmem %s2168_s29, 1024  ;;  %p2170_p0 = scmp.lt.s32.totalorder %s492_s27, %s2168_s29 }
  0x77   : > { %p2165_p9 = pnand %p2163_p8, %p2656_p4  ;;  %p2171_p2 = scmp.lt.s32.totalorder %s2169_s23, %s2162_s13 }
  0x79   : > { %p2166_p6 = pneg %p2165_p9  ;;  %p2172_p13 = por %p2171_p2, %p2170_p0 }
  0x7b   : > { %p2173_p3 = pnand %p2172_p13, %p2166_p6 }
  0x7d   : > { %2176 = shalt.err (!%p2173_p3)
}
  0x7e   : > { %p3497_p5 = scmp.ne.s32.totalorder %s3486_s12, 0  ;;  %s3498_s24 = scalar_lea.sflag [#allocation12], %s2638_s22 }
  0x7f   : > { %s3499_s0 = sld [smem:[#allocation34_spill]]  ;;  %s376_s29 = scalar_lea.vmem [#allocation2], %s2626_s30 }
  0x80   : > { %1919 = dma.hbm_to_vmem [thread:$0]  (!%p3497_p5), %s2720_s1, 512, %s492_s27, %s3498_s24  }
  0x81   : > { %s386_s21 = sshll.u32 %s376_s29, 4  ;;  %s2756_s23 = scalar_lea.hbm %s3444_s2, %s2629_s11  ;;  %s2750_s21 = int_to_ptr.vmem [resolvable:$true] %s386_s21 }
  0x82   : > { %s3500_s3 = sand.u32 1, %s2471_s15  }
  0x83   : > { %s373_s1 = scalar_lea.sflag [#allocation3], %s3500_s3 }
  0x85   : > { %s2747_s18 = scalar_lea.hbm %s3499_s0, %s2629_s11  ;;  %s2182_s7 = scalar_lea.hbm %s3499_s0, 1024 }
  0x86   : > { %s2177_s27 = scalar_lea.hbm %s2747_s18, 512  ;;  %p2183_p10 = scmp.lt.u32.totalorder %s2747_s18, %s3499_s0 }
  0x87   : > { %p2178_p13 = scmp.ne.s32.totalorder %s2747_s18, %s2177_s27  ;;  %p2184_p12 = scmp.lt.u32.totalorder %s2182_s7, %s2177_s27 }
  0x88   : > { %p2186_p8 = scmp.lt.u32.totalorder %s2177_s27, %s2747_s18 }
  0x89   : > { %p2180_p11 = pnand %p2178_p13, %p2656_p4  ;;  %p2185_p1 = por %p2184_p12, %p2183_p10 }
  0x8b   : > { %p2181_p7 = pneg %p2180_p11  ;;  %p2187_p9 = por %p2186_p8, %p2185_p1 }
  0x8d   : > { %p2188_p6 = pnand %p2187_p9, %p2181_p7 }
  0x8f   : > { %2191 = shalt.err (!%p2188_p6)
}
  0x90   : > { %s2192_s3 = scalar_lea.vmem %s2750_s21, 512  ;;  %s2488_s13 = smov [#allocation2]  }
  0x91   : > { %p2193_p0 = scmp.ne.s32.totalorder %s2750_s21, %s2192_s3  ;;  %s2197_s9 = sshll.u32 %s2488_s13, 4  ;;  %s2198_s9 = int_to_ptr.vmem [resolvable:$false] %s2197_s9 }
  0x92   : > { %s2199_s5 = scalar_lea.vmem %s2198_s9, 1024  ;;  %p2200_p13 = scmp.lt.s32.totalorder %s2750_s21, %s2198_s9 }
  0x93   : > { %p2195_p2 = pnand %p2193_p0, %p2656_p4  ;;  %p2201_p11 = scmp.lt.s32.totalorder %s2199_s5, %s2192_s3 }
  0x95   : > { %p2196_p3 = pneg %p2195_p2  ;;  %p2202_p10 = por %p2201_p11, %p2200_p13 }
  0x97   : > { %p2203_p12 = pnand %p2202_p10, %p2196_p3 }
  0x99   : > { %2206 = shalt.err (!%p2203_p12)
}
  0x9a   : > { %1904 = dma.hbm_to_vmem [thread:$0]  (!%p3497_p5), %s2747_s18, 512, %s2750_s21, %s373_s1  }
  0x9b   : > { %s418_s27 = scalar_lea.vmem [#allocation7], %s2626_s30  ;;  %s2786_s29 = scalar_lea.hbm %s3446_s4, %s2629_s11 }
  0x9c   : > { %s428_s24 = sshll.u32 %s418_s27, 4  ;;  %s2207_s3 = scalar_lea.hbm %s2756_s23, 512  ;;  %s429_s24 = int_to_ptr.vmem [resolvable:$true] %s428_s24 }
  0x9d   : > { %p2208_p7 = scmp.ne.s32.totalorder %s2756_s23, %s2207_s3  ;;  %s2212_s5 = scalar_lea.hbm %s3444_s2, 1024 }
  0x9e   : > { %p2213_p9 = scmp.lt.u32.totalorder %s2756_s23, %s3444_s2  ;;  %p2214_p6 = scmp.lt.u32.totalorder %s2212_s5, %s2207_s3 }
  0x9f   : > { %p2210_p1 = pnand %p2208_p7, %p2656_p4  ;;  %p2216_p2 = scmp.lt.u32.totalorder %s2207_s3, %s2756_s23 }
  0xa0   : > { %p2215_p0 = por %p2214_p6, %p2213_p9 }
  0xa1   : > { %p2211_p8 = pneg %p2210_p1 }
  0xa2   : > { %p2217_p3 = por %p2216_p2, %p2215_p0 }
  0xa4   : > { %p2218_p13 = pnand %p2217_p3, %p2211_p8 }
  0xa6   : > { %2221 = shalt.err (!%p2218_p13)
}
  0xa7   : > { %s2222_s18 = scalar_lea.vmem %s429_s24, 512  ;;  %s2489_s21 = smov [#allocation7]  }
  0xa8   : > { %p2223_p11 = scmp.ne.s32.totalorder %s429_s24, %s2222_s18  ;;  %s2227_s1 = sshll.u32 %s2489_s21, 4  ;;  %s2228_s1 = int_to_ptr.vmem [resolvable:$false] %s2227_s1 }
  0xa9   : > { %s2229_s27 = scalar_lea.vmem %s2228_s1, 1024  ;;  %p2230_p7 = scmp.lt.s32.totalorder %s429_s24, %s2228_s1 }
  0xaa   : > { %p2225_p10 = pnand %p2223_p11, %p2656_p4  ;;  %p2231_p1 = scmp.lt.s32.totalorder %s2229_s27, %s2222_s18 }
  0xac   : > { %p2226_p12 = pneg %p2225_p10  ;;  %p2232_p5 = por %p2231_p1, %p2230_p7 }
  0xae   : > { %p2233_p6 = pnand %p2232_p5, %p2226_p12 }
  0xb0   : > { %2236 = shalt.err (!%p2233_p6)
}
  0xb1   : > { %p3501_p9 = scmp.ne.s32.totalorder %s3486_s12, 0  ;;  %s3502_s0 = scalar_lea.sflag [#allocation6], %s2638_s22 }
  0xb2   : > { %s460_s15 = scalar_lea.vmem [#allocation10], %s2626_s30  ;;  %s2812_s13 = scalar_lea.hbm %s3448_s6, %s2629_s11 }
  0xb3   : > { %1910 = dma.hbm_to_vmem [thread:$0]  (!%p3501_p9), %s2756_s23, 512, %s429_s24, %s3502_s0  }
  0xb4   : > { %s470_s20 = sshll.u32 %s460_s15, 4  ;;  %s2237_s9 = scalar_lea.hbm %s2786_s29, 512  ;;  %s471_s20 = int_to_ptr.vmem [resolvable:$true] %s470_s20 }
  0xb5   : > { %p2238_p5 = scmp.ne.s32.totalorder %s2786_s29, %s2237_s9  ;;  %s2242_s21 = scalar_lea.hbm %s3446_s4, 1024 }
  0xb6   : > { %p2243_p2 = scmp.lt.u32.totalorder %s2786_s29, %s3446_s4  ;;  %p2244_p3 = scmp.lt.u32.totalorder %s2242_s21, %s2237_s9 }
  0xb7   : > { %p2240_p8 = pnand %p2238_p5, %p2656_p4  ;;  %p2246_p11 = scmp.lt.u32.totalorder %s2237_s9, %s2786_s29 }
  0xb8   : > { %p2245_p13 = por %p2244_p3, %p2243_p2 }
  0xb9   : > { %p2241_p0 = pneg %p2240_p8 }
  0xba   : > { %p2247_p10 = por %p2246_p11, %p2245_p13 }
  0xbc   : > { %p2248_p12 = pnand %p2247_p10, %p2241_p0 }
  0xbe   : > { %2251 = shalt.err (!%p2248_p12)
}
  0xbf   : > { %s2252_s11 = scalar_lea.vmem %s471_s20, 512  ;;  %s2490_s23 = smov [#allocation10]  }
  0xc0   : > { %p2253_p7 = scmp.ne.s32.totalorder %s471_s20, %s2252_s11  ;;  %s2257_s24 = sshll.u32 %s2490_s23, 4  ;;  %s2258_s24 = int_to_ptr.vmem [resolvable:$false] %s2257_s24 }
  0xc1   : > { %s2259_s0 = scalar_lea.vmem %s2258_s24, 1024  ;;  %p2260_p5 = scmp.lt.s32.totalorder %s471_s20, %s2258_s24 }
  0xc2   : > { %p2255_p1 = pnand %p2253_p7, %p2656_p4  ;;  %p2261_p8 = scmp.lt.s32.totalorder %s2259_s0, %s2252_s11 }
  0xc4   : > { %p2256_p6 = pneg %p2255_p1  ;;  %p2262_p9 = por %p2261_p8, %p2260_p5 }
  0xc6   : > { %p2263_p2 = pnand %p2262_p9, %p2256_p6 }
  0xc8   : > { %2266 = shalt.err (!%p2263_p2)
}
  0xc9   : > { %p3503_p3 = scmp.ne.s32.totalorder %s3486_s12, 0  ;;  %s3504_s15 = scalar_lea.sflag [#allocation9], %s2638_s22 }
  0xca   : > { %s502_s7 = scalar_lea.vmem [#allocation13], %s2626_s30  ;;  %s2267_s9 = scalar_lea.hbm %s2812_s13, 512 }
  0xcb   : > { %1916 = dma.hbm_to_vmem [thread:$0]  (!%p3503_p3), %s2786_s29, 512, %s471_s20, %s3504_s15  }
  0xcc   : > { %s512_s3 = sshll.u32 %s502_s7, 4  ;;  %p2268_p0 = scmp.ne.s32.totalorder %s2812_s13, %s2267_s9  ;;  %s513_s3 = int_to_ptr.vmem [resolvable:$true] %s512_s3 }
  0xcd   : > { %s2272_s21 = scalar_lea.hbm %s3448_s6, 1024  ;;  %p2273_p11 = scmp.lt.u32.totalorder %s2812_s13, %s3448_s6 }
  0xce   : > { %p2270_p9 = pnand %p2268_p0, %p2656_p4  ;;  %p2274_p10 = scmp.lt.u32.totalorder %s2272_s21, %s2267_s9 }
  0xcf   : > { %p2276_p7 = scmp.lt.u32.totalorder %s2267_s9, %s2812_s13 }
  0xd0   : > { %p2271_p13 = pneg %p2270_p9  ;;  %p2275_p12 = por %p2274_p10, %p2273_p11 }
  0xd2   : > { %p2277_p1 = por %p2276_p7, %p2275_p12 }
  0xd4   : > { %p2278_p6 = pnand %p2277_p1, %p2271_p13 }
  0xd6   : > { %2281 = shalt.err (!%p2278_p6)
}
  0xd7   : > { %s2282_s30 = scalar_lea.vmem %s513_s3, 512  ;;  %s2491_s29 = smov [#allocation13]  }
  0xd8   : > { %p2283_p5 = scmp.ne.s32.totalorder %s513_s3, %s2282_s30  ;;  %s2287_s20 = sshll.u32 %s2491_s29, 4  ;;  %s2288_s20 = int_to_ptr.vmem [resolvable:$false] %s2287_s20 }
  0xd9   : > { %s2289_s11 = scalar_lea.vmem %s2288_s20, 1024  ;;  %p2290_p0 = scmp.lt.s32.totalorder %s513_s3, %s2288_s20 }
  0xda   : > { %p2285_p8 = pnand %p2283_p5, %p2656_p4  ;;  %p2291_p9 = scmp.lt.s32.totalorder %s2289_s11, %s2282_s30 }
  0xdc   : > { %p2286_p2 = pneg %p2285_p8  ;;  %p2292_p3 = por %p2291_p9, %p2290_p0 }
  0xde   : > { %p2293_p10 = pnand %p2292_p3, %p2286_p2 }
  0xe0   : > { %2296 = shalt.err (!%p2293_p10)
}
  0xe1   : > { %p3505_p11 = scmp.ne.s32.totalorder %s3486_s12, 0  ;;  %s3506_s23 = scalar_lea.sflag [#allocation12], %s2638_s22 }
  0xe2   : > { %p3507_p13 = scmp.ne.s32.totalorder %s3492_s17, 0 }
  0xe3   : > { %1922 = dma.hbm_to_vmem [thread:$0]  (!%p3505_p11), %s2812_s13, 512, %s513_s3, %s3506_s23  }
  0xe4   : > { %521 = sbr.rel (%p3507_p13) target bundleno = 415 (0x19f), region = 48  ;;  %s2856_s28 = sand.u32 (!%p3507_p13), 1, %s2467_s14  }
  0xe5   : > { %s2859_s24 = sshll.u32 (!%p3507_p13), %s2856_s28, 5  ;;  %s524_s0 = scalar_lea.sflag (!%p3507_p13), [#allocation3], %s2856_s28 }
  0xe6   : > { %s2863_s15 = scalar_lea.vmem (!%p3507_p13), [#allocation2], %s2859_s24  ;;  %p3508_p4 = scmp.ne.s32.totalorder (!%p3507_p13), %s3481_s25, 0 }
  0xeb   : > { %2434 = dma.done.wait (%p3508_p4), %s524_s0, 512  }
  0xec   : > { %2436 = vsyncadd (%p3508_p4), %s524_s0, 4294966784  ;;  %s2870_s12 = sand.u32 1, %s2584_s19   ;;  %s2874_s17 = scalar_lea.vmem [#allocation5], %s2859_s24 }
  0xed   : > { %s533_s22 = scalar_lea.sflag [#allocation6], %s2870_s12 }
  0xee   : > { %2438 = dma.done.wait (%p3508_p4), %s533_s22, 1024  }
  0xef   : > { %2440 = vsyncadd (%p3508_p4), %s533_s22, 4294966272  ;;  %s2881_s13 = scalar_lea.vmem [#allocation7], %s2859_s24  ;;  %s551_s7 = scalar_lea.sflag [#allocation9], %s2870_s12 }
  0xf0   : > { %s2885_s3 = scalar_lea.vmem [#allocation8], %s2859_s24 }
  0xf1   : > { %2442 = dma.done.wait (%p3508_p4), %s551_s7, 1024  }
  0xf2   : > { %2444 = vsyncadd (%p3508_p4), %s551_s7, 4294966272  ;;  %s2892_s19 = scalar_lea.vmem [#allocation10], %s2859_s24  ;;  %s569_s9 = scalar_lea.sflag [#allocation12], %s2870_s12 }
  0xf3   : > { %s2896_s5 = scalar_lea.vmem [#allocation11], %s2859_s24 }
  0xf4   : > { %2446 = dma.done.wait (%p3508_p4), %s569_s9, 1024  }
  0xf5   : > { %2448 = vsyncadd (%p3508_p4), %s569_s9, 4294966272  ;;  %s2903_s18 = smul.u32 192, %s2856_s28  ;;  %s2906_s21 = scalar_lea.vmem [#allocation13], %s2859_s24  ;;  %v2912_v1 = vld [vmem:[%s2863_s15] sm:$0xff]  ;;  %v2920_v4 = vld [vmem:[%s2863_s15 + $0x8] sm:$0xff] }
  0xf6   : > { %v2909_v0 = vld [vmem:[%s2906_s21] sm:$0xff]  ;;  %v2915_v2 = vld [vmem:[%s2906_s21 + $0x8] sm:$0xff]  ;;  %v2923_v5 = vld [vmem:[%s2906_s21 + $0x10] sm:$0xff]  ;;  %s2944_s25 = scalar_lea.vmem [#allocation18], %s2859_s24  ;;  %s3049_s27 = smul.u32 3072, %s2475_s16  ;;  %v779_v48 = vsub.f32 1.0, %v2912_v1  ;;  %1989 = vlog2.f32 %v2912_v1 }
  0xf7   : > { %v827_v3 = vmul.f32 %v2912_v1, %v2909_v0  ;;  %v2926_v6 = vld [vmem:[%s2863_s15 + $0x10] sm:$0xff]  ;;  %v828_v7 = vmul.f32 %v2920_v4, %v2915_v2  ;;  %v2933_v9 = vld [vmem:[%s2906_s21 + $0x18] sm:$0xff]  ;;  %v2941_v12 = vld [vmem:[%s2874_s17] sm:$0xff]  ;;  %755 = vst [vmem:[%s2944_s25] sm:$0xff] %v2909_v0  ;;  %s2959_s1 = scalar_lea.vmem [#allocation15], %s2903_s18  ;;  %s1874_s30 = sshll.u32 %s2475_s16, 9  ;;  %v780_v52 = vsub.f32 1.0, %v2920_v4 }
  0xf8   : > { %v829_v8 = vmul.f32 %v2926_v6, %v2923_v5  ;;  %v2936_v10 = vld [vmem:[%s2863_s15 + $0x18] sm:$0xff]  ;;  %756 = vst [vmem:[%s2944_s25 + $0x8] sm:$0xff] %v2915_v2  ;;  %v917_v13 = vmul.f32 %v2941_v12, %v2909_v0  ;;  %v2953_v14 = vld [vmem:[%s2874_s17 + $0x8] sm:$0xff]  ;;  %v2956_v15 = vld [vmem:[%s2874_s17 + $0x10] sm:$0xff]  ;;  %s1384_s29 = sshll.u32 %s2944_s25, 4  ;;  %s1351_s20 = sshll.u32 %s2959_s1, 4  ;;  %1991 = vlog2.f32 %v779_v48  ;;  %s3084_s29 = int_to_ptr.vmem [resolvable:$true] %s1384_s29  ;;  %s3098_s20 = int_to_ptr.vmem [resolvable:$true] %s1351_s20 }
  0xf9   : > { %v830_v11 = vmul.f32 %v2936_v10, %v2933_v9  ;;  %835 = vst [vmem:[%s2959_s1] sm:$0xff] %v827_v3  ;;  %v918_v16 = vmul.f32 %v2953_v14, %v2915_v2  ;;  %v919_v17 = vmul.f32 %v2956_v15, %v2923_v5  ;;  %v2967_v18 = vld [vmem:[%s2874_s17 + $0x18] sm:$0xff]  ;;  %836 = vst [vmem:[%s2959_s1 + $0x8] sm:$0xff] %v828_v7  ;;  %v2974_v20 = vld [vmem:[%s2881_s13] sm:$0xff]  ;;  %v781_v54 = vsub.f32 1.0, %v2926_v6  ;;  %s3082_s23 = scalar_lea.hbm %s3452_s10, %s1874_s30  ;;  %s3096_s15 = scalar_lea.hbm %s3450_s8, %s3049_s27 }
  0xfa   : > { %837 = vst [vmem:[%s2959_s1 + $0x10] sm:$0xff] %v829_v8  ;;  %v920_v19 = vmul.f32 %v2967_v18, %v2933_v9  ;;  %v1008_v21 = vmul.f32 %v2974_v20, %v2909_v0  ;;  %v2980_v22 = vld [vmem:[%s2881_s13 + $0x8] sm:$0xff]  ;;  %v2983_v23 = vld [vmem:[%s2881_s13 + $0x10] sm:$0xff]  ;;  %1751 = vst [vmem:[%s2959_s1 + $0x20] sm:$0xff] %v917_v13  ;;  %v782_v55 = vsub.f32 1.0, %v2936_v10  ;;  %v867_v56 = vsub.f32 1.0, %v2941_v12 }
  0xfb   : > { %838 = vst [vmem:[%s2959_s1 + $0x18] sm:$0xff] %v830_v11  ;;  %v1009_v24 = vmul.f32 %v2980_v22, %v2915_v2  ;;  %v1010_v25 = vmul.f32 %v2983_v23, %v2923_v5  ;;  %v2991_v26 = vld [vmem:[%s2881_s13 + $0x18] sm:$0xff]  ;;  %1752 = vst [vmem:[%s2959_s1 + $0x28] sm:$0xff] %v918_v16  ;;  %v2998_v28 = vld [vmem:[%s2885_s3] sm:$0xff]  ;;  %v868_v57 = vsub.f32 1.0, %v2953_v14  ;;  %1993 = vlog2.f32 %v2920_v4  ;;  %s1322_s22 = scalar_lea.sflag [#allocation19], %s2856_s28 }
  0xfc   : > { %1753 = vst [vmem:[%s2959_s1 + $0x30] sm:$0xff] %v919_v17  ;;  %v1011_v27 = vmul.f32 %v2991_v26, %v2933_v9  ;;  %1754 = vst [vmem:[%s2959_s1 + $0x38] sm:$0xff] %v920_v19  ;;  %v1099_v29 = vmul.f32 %v2998_v28, %v2909_v0  ;;  %v3004_v30 = vld [vmem:[%s2885_s3 + $0x8] sm:$0xff]  ;;  %v3007_v31 = vld [vmem:[%s2885_s3 + $0x10] sm:$0xff]  ;;  %s2297_s17 = scalar_lea.vmem %s3084_s29, 512  ;;  %p3509_p12 = scmp.ne.s32.totalorder %s3482_s26, 0 }
  0xfd   : > { %1775 = vst [vmem:[%s2959_s1 + $0x40] sm:$0xff] %v1008_v21  ;;  %v1100_v32 = vmul.f32 %v3004_v30, %v2915_v2  ;;  %v1101_v33 = vmul.f32 %v3007_v31, %v2923_v5  ;;  %v3015_v34 = vld [vmem:[%s2885_s3 + $0x18] sm:$0xff]  ;;  %1776 = vst [vmem:[%s2959_s1 + $0x48] sm:$0xff] %v1009_v24  ;;  %v3022_v36 = vld [vmem:[%s2892_s19] sm:$0xff]  ;;  %p2298_p3 = scmp.ne.s32.totalorder %s3084_s29, %s2297_s17  ;;  %s2492_s13 = smov [#allocation18]  }
  0xfe   : > { %1777 = vst [vmem:[%s2959_s1 + $0x50] sm:$0xff] %v1010_v25  ;;  %v1102_v35 = vmul.f32 %v3015_v34, %v2933_v9  ;;  %1778 = vst [vmem:[%s2959_s1 + $0x58] sm:$0xff] %v1011_v27  ;;  %v1190_v37 = vmul.f32 %v3022_v36, %v2909_v0  ;;  %v3028_v38 = vld [vmem:[%s2892_s19 + $0x8] sm:$0xff]  ;;  %v3031_v39 = vld [vmem:[%s2892_s19 + $0x10] sm:$0xff]  ;;  %s2301_s7 = sshll.u32 %s2492_s13, 4  ;;  %s2302_s7 = int_to_ptr.vmem [resolvable:$false] %s2301_s7 }
  0xff   : > { %1799 = vst [vmem:[%s2959_s1 + $0x60] sm:$0xff] %v1099_v29  ;;  %v1191_v40 = vmul.f32 %v3028_v38, %v2915_v2  ;;  %v1192_v41 = vmul.f32 %v3031_v39, %v2923_v5  ;;  %v3039_v42 = vld [vmem:[%s2892_s19 + $0x18] sm:$0xff]  ;;  %1800 = vst [vmem:[%s2959_s1 + $0x68] sm:$0xff] %v1100_v32  ;;  %v3046_v44 = vld [vmem:[%s2896_s5] sm:$0xff]  ;;  %p2299_p7 = pnand %p2298_p3, %p3509_p12  ;;  %s2303_s3 = scalar_lea.vmem %s2302_s7, 1024 }
 0x100   : > { %1801 = vst [vmem:[%s2959_s1 + $0x70] sm:$0xff] %v1101_v33  ;;  %v1193_v43 = vmul.f32 %v3039_v42, %v2933_v9  ;;  %1802 = vst [vmem:[%s2959_s1 + $0x78] sm:$0xff] %v1102_v35  ;;  %v1281_v45 = vmul.f32 %v3046_v44, %v2909_v0  ;;  %v3055_v46 = vld [vmem:[%s2896_s5 + $0x8] sm:$0xff]  ;;  %v3058_v47 = vld [vmem:[%s2896_s5 + $0x10] sm:$0xff]  ;;  %p2304_p6 = scmp.lt.s32.totalorder %s3084_s29, %s2302_s7  ;;  %p2305_p5 = scmp.lt.s32.totalorder %s2303_s3, %s2297_s17 }
 0x101   : > { %1823 = vst [vmem:[%s2959_s1 + $0x80] sm:$0xff] %v1190_v37  ;;  %v1282_v49 = vmul.f32 %v3055_v46, %v2915_v2  ;;  %v1283_v50 = vmul.f32 %v3058_v47, %v2923_v5  ;;  %v3069_v51 = vld [vmem:[%s2896_s5 + $0x18] sm:$0xff]  ;;  %1824 = vst [vmem:[%s2959_s1 + $0x88] sm:$0xff] %v1191_v40  ;;  %p2300_p1 = pneg %p2299_p7 }
 0x102   : > { %1825 = vst [vmem:[%s2959_s1 + $0x90] sm:$0xff] %v1192_v41  ;;  %v1284_v53 = vmul.f32 %v3069_v51, %v2933_v9  ;;  %1826 = vst [vmem:[%s2959_s1 + $0x98] sm:$0xff] %v1193_v43  ;;  %p2306_p8 = por %p2305_p5, %p2304_p6 }
 0x103   : > { %1847 = vst [vmem:[%s2959_s1 + $0xa0] sm:$0xff] %v1281_v45  ;;  %757 = vst [vmem:[%s2944_s25 + $0x10] sm:$0xff] %v2923_v5 }
 0x104   : > { %1848 = vst [vmem:[%s2959_s1 + $0xa8] sm:$0xff] %v1282_v49  ;;  %1849 = vst [vmem:[%s2959_s1 + $0xb0] sm:$0xff] %v1283_v50  ;;  %p2307_p2 = pnand %p2306_p8, %p2300_p1 }
 0x105   : > { %758 = vst [vmem:[%s2944_s25 + $0x18] sm:$0xff] %v2933_v9  ;;  %1850 = vst [vmem:[%s2959_s1 + $0xb8] sm:$0xff] %v1284_v53 }
 0x106   : > { %2310 = shalt.err (!%p2307_p2)
}
 0x107   : > { %s2311_s19 = scalar_lea.hbm %s3082_s23, 512  ;;  %s2315_s25 = scalar_lea.hbm %s3452_s10, 1024 }
 0x108   : > { %p2312_p0 = scmp.ne.s32.totalorder %s3082_s23, %s2311_s19  ;;  %p2316_p11 = scmp.lt.u32.totalorder %s3082_s23, %s3452_s10 }
 0x109   : > { %p2317_p13 = scmp.lt.u32.totalorder %s2315_s25, %s2311_s19  ;;  %p2319_p3 = scmp.lt.u32.totalorder %s2311_s19, %s3082_s23 }
 0x10a   : > { %p2313_p9 = pnand %p2312_p0, %p3509_p12 }
 0x10b   : > { %p2318_p4 = por %p2317_p13, %p2316_p11 }
 0x10c   : > { %p2314_p10 = pneg %p2313_p9 }
 0x10d   : > { %p2320_p7 = por %p2319_p3, %p2318_p4 }
 0x10f   : > { %p2321_p1 = pnand %p2320_p7, %p2314_p10 }
 0x111   : > { %2324 = shalt.err (!%p2321_p1)
}
 0x112   : > { %1896 = dma.vmem_to_hbm [thread:$0]  (%p3509_p12), %s3084_s29, 512, %s3082_s23, %s1322_s22   ;;  %1995 = vlog2.f32 %v780_v52 }
 0x113   : > { %s3130_s16 = scalar_lea.vmem [#allocation17], %s2903_s18  ;;  %s1312_s11 = scalar_lea.sflag [#allocation16], %s2870_s12 }
 0x114   : > { %847 = vst [vmem:[%s3130_s16] sm:$0xff] %v2912_v1  ;;  %848 = vst [vmem:[%s3130_s16 + $0x8] sm:$0xff] %v2920_v4  ;;  %s2325_s24 = scalar_lea.vmem %s3098_s20, 3072  ;;  %s2493_s0 = smov [#allocation15]  }
 0x115   : > { %p2326_p6 = scmp.ne.s32.totalorder %s3098_s20, %s2325_s24  ;;  %s2329_s17 = sshll.u32 %s2493_s0, 4  ;;  %s2330_s17 = int_to_ptr.vmem [resolvable:$false] %s2329_s17 }
 0x116   : > { %s2331_s13 = scalar_lea.vmem %s2330_s17, 6144  ;;  %p2332_p2 = scmp.lt.s32.totalorder %s3098_s20, %s2330_s17 }
 0x117   : > { %p2327_p5 = pnand %p2326_p6, %p3509_p12  ;;  %p2333_p0 = scmp.lt.s32.totalorder %s2331_s13, %s2325_s24 }
 0x119   : > { %p2328_p8 = pneg %p2327_p5  ;;  %p2334_p9 = por %p2333_p0, %p2332_p2 }
 0x11b   : > { %p2335_p10 = pnand %p2334_p9, %p2328_p8 }
 0x11d   : > { %2338 = shalt.err (!%p2335_p10)
}
 0x11e   : > { %s2339_s29 = scalar_lea.hbm %s3096_s15, 3072  ;;  %s2343_s7 = scalar_lea.hbm %s3450_s8, 6144 }
 0x11f   : > { %p2340_p11 = scmp.ne.s32.totalorder %s3096_s15, %s2339_s29  ;;  %p2344_p3 = scmp.lt.u32.totalorder %s3096_s15, %s3450_s8 }
 0x120   : > { %p2345_p7 = scmp.lt.u32.totalorder %s2343_s7, %s2339_s29  ;;  %p2347_p6 = scmp.lt.u32.totalorder %s2339_s29, %s3096_s15 }
 0x121   : > { %p2341_p13 = pnand %p2340_p11, %p3509_p12 }
 0x122   : > { %p2346_p1 = por %p2345_p7, %p2344_p3 }
 0x123   : > { %p2342_p4 = pneg %p2341_p13 }
 0x124   : > { %p2348_p5 = por %p2347_p6, %p2346_p1 }
 0x126   : > { %p2349_p8 = pnand %p2348_p5, %p2342_p4 }
 0x128   : > { %2352 = shalt.err (!%p2349_p8)
}
 0x129   : > { %s2494_s9 = smov 512   ;;  %s2495_s5 = smov 32   ;;  %1997 = vlog2.f32 %v2926_v6  ;;  %849 = vst [vmem:[%s3130_s16 + $0x10] sm:$0xff] %v2926_v6  ;;  %850 = vst [vmem:[%s3130_s16 + $0x18] sm:$0xff] %v2936_v10  ;;  %v869_v58 = vsub.f32 1.0, %v2956_v15  ;;  %v1990_v59 = vpop.eup %1989  ;;  %v870_v60 = vsub.f32 1.0, %v2967_v18 }
 0x12a   : > { %1894 = dma.vmem_to_hbm [thread:$0]  (%p3509_p12), %s3098_s20, 3072, %s3096_s15, %s1312_s11, %s2494_s9, %s2494_s9, %s2495_s5   ;;  %1999 = vlog2.f32 %v781_v54  ;;  %v1992_v61 = vpop.eup %1991  ;;  %v958_v62 = vsub.f32 1.0, %v2974_v20  ;;  %v959_v63 = vsub.f32 1.0, %v2980_v22  ;;  %v768_v1 = vmul.f32 0.6931472, %v1990_v59 }
 0x12b   : > { %1759 = vst [vmem:[%s3130_s16 + $0x20] sm:$0xff] %v2941_v12  ;;  %1760 = vst [vmem:[%s3130_s16 + $0x28] sm:$0xff] %v2953_v14  ;;  %2001 = vlog2.f32 %v2936_v10  ;;  %s1367_s20 = sshll.u32 %s3130_s16, 4  ;;  %s3510_s1 = sld [smem:[#allocation39_spill]]  ;;  %v1994_v3 = vpop.eup %1993  ;;  %v3233_v4 = vsub.f32 1.0, %v2909_v0  ;;  %v3236_v7 = vsub.f32 1.0, %v2915_v2  ;;  %s3216_s20 = int_to_ptr.vmem [resolvable:$true] %s1367_s20 }
 0x12c   : > { %1761 = vst [vmem:[%s3130_s16 + $0x30] sm:$0xff] %v2956_v15  ;;  %1762 = vst [vmem:[%s3130_s16 + $0x38] sm:$0xff] %v2967_v18  ;;  %2003 = vlog2.f32 %v782_v55  ;;  %v784_v6 = vmul.f32 0.6931472, %v1992_v61  ;;  %s2353_s24 = scalar_lea.vmem %s3216_s20, 3072  ;;  %s2496_s0 = smov [#allocation17]  }
 0x12d   : > { %1783 = vst [vmem:[%s3130_s16 + $0x40] sm:$0xff] %v2974_v20  ;;  %1784 = vst [vmem:[%s3130_s16 + $0x48] sm:$0xff] %v2980_v22  ;;  %2005 = vlog2.f32 %v2941_v12  ;;  %p2354_p2 = scmp.ne.s32.totalorder %s3216_s20, %s2353_s24  ;;  %s2357_s17 = sshll.u32 %s2496_s0, 4  ;;  %s2358_s17 = int_to_ptr.vmem [resolvable:$false] %s2357_s17 }
 0x12e   : > { %1785 = vst [vmem:[%s3130_s16 + $0x50] sm:$0xff] %v2983_v23  ;;  %1786 = vst [vmem:[%s3130_s16 + $0x58] sm:$0xff] %v2991_v26  ;;  %2007 = vlog2.f32 %v867_v56  ;;  %s2359_s13 = scalar_lea.vmem %s2358_s17, 6144  ;;  %p2360_p10 = scmp.lt.s32.totalorder %s3216_s20, %s2358_s17 }
 0x12f   : > { %1807 = vst [vmem:[%s3130_s16 + $0x60] sm:$0xff] %v2998_v28  ;;  %1808 = vst [vmem:[%s3130_s16 + $0x68] sm:$0xff] %v3004_v30  ;;  %2009 = vlog2.f32 %v2953_v14  ;;  %p2355_p0 = pnand %p2354_p2, %p3509_p12  ;;  %p2361_p11 = scmp.lt.s32.totalorder %s2359_s13, %s2353_s24 }
 0x130   : > { %1809 = vst [vmem:[%s3130_s16 + $0x70] sm:$0xff] %v3007_v31  ;;  %1810 = vst [vmem:[%s3130_s16 + $0x78] sm:$0xff] %v3015_v34  ;;  %2011 = vlog2.f32 %v868_v57 }
 0x131   : > { %1831 = vst [vmem:[%s3130_s16 + $0x80] sm:$0xff] %v3022_v36  ;;  %1832 = vst [vmem:[%s3130_s16 + $0x88] sm:$0xff] %v3028_v38  ;;  %s3214_s30 = scalar_lea.hbm %s3510_s1, %s3049_s27  ;;  %2013 = vlog2.f32 %v2956_v15  ;;  %p2356_p9 = pneg %p2355_p0 }
 0x132   : > { %1833 = vst [vmem:[%s3130_s16 + $0x90] sm:$0xff] %v3031_v39  ;;  %1834 = vst [vmem:[%s3130_s16 + $0x98] sm:$0xff] %v3039_v42  ;;  %p2362_p13 = por %p2361_p11, %p2360_p10 }
 0x133   : > { %1855 = vst [vmem:[%s3130_s16 + $0xa0] sm:$0xff] %v3046_v44  ;;  %1856 = vst [vmem:[%s3130_s16 + $0xa8] sm:$0xff] %v3055_v46 }
 0x134   : > { %1857 = vst [vmem:[%s3130_s16 + $0xb0] sm:$0xff] %v3058_v47  ;;  %1858 = vst [vmem:[%s3130_s16 + $0xb8] sm:$0xff] %v3069_v51  ;;  %p2363_p4 = pnand %p2362_p13, %p2356_p9 }
 0x136   : > { %2366 = shalt.err (!%p2363_p4)
}
 0x137   : > { %s2367_s16 = scalar_lea.hbm %s3214_s30, 3072  ;;  %s2371_s22 = scalar_lea.hbm %s3510_s1, 6144 }
 0x138   : > { %p2368_p3 = scmp.ne.s32.totalorder %s3214_s30, %s2367_s16  ;;  %p2372_p6 = scmp.lt.u32.totalorder %s3214_s30, %s3510_s1 }
 0x139   : > { %p2373_p5 = scmp.lt.u32.totalorder %s2371_s22, %s2367_s16  ;;  %p2375_p2 = scmp.lt.u32.totalorder %s2367_s16, %s3214_s30 }
 0x13a   : > { %p2369_p7 = pnand %p2368_p3, %p3509_p12 }
 0x13b   : > { %p2374_p8 = por %p2373_p5, %p2372_p6 }
 0x13c   : > { %p2370_p1 = pneg %p2369_p7 }
 0x13d   : > { %p2376_p0 = por %p2375_p2, %p2374_p8 }
 0x13f   : > { %p2377_p9 = pnand %p2376_p0, %p2370_p1 }
 0x141   : > { %2380 = shalt.err (!%p2377_p9)
}
 0x142   : > { %1895 = dma.vmem_to_hbm [thread:$0]  (%p3509_p12), %s3216_s20, 3072, %s3214_s30, %s1312_s11, %s2494_s9, %s2494_s9, %s2495_s5   ;;  %v1996_v8 = vpop.eup %1995  ;;  %v775_v10 = vmax.f32 %v768_v1, -100.0  ;;  %v770_v11 = vmul.f32 0.6931472, %v1994_v3  ;;  %v3266_v12 = vsub.f32 1.0, %v2923_v5  ;;  %2015 = vlog2.f32 %v869_v58 }
 0x143   : > { %v1998_v13 = vpop.eup %1997  ;;  %v791_v14 = vmax.f32 %v784_v6, -100.0  ;;  %v786_v15 = vmul.f32 0.6931472, %v1996_v8  ;;  %v3269_v16 = vsub.f32 1.0, %v2933_v9  ;;  %2017 = vlog2.f32 %v2967_v18  ;;  %s3284_s12 = scalar_lea.vmem [#allocation14], %s2903_s18  ;;  %s3511_s20 = sld [smem:[#allocation38_spill]] }
 0x144   : > { %v2000_v17 = vpop.eup %1999  ;;  %v795_v19 = vmul.f32 %v775_v10, %v2909_v0  ;;  %v776_v21 = vmax.f32 %v770_v11, -100.0  ;;  %v772_v24 = vmul.f32 0.6931472, %v1998_v13  ;;  %2019 = vlog2.f32 %v870_v60  ;;  %s1335_s18 = sshll.u32 %s3284_s12, 4  ;;  %s2497_s30 = smov [#allocation14]   ;;  %s3387_s18 = int_to_ptr.vmem [resolvable:$true] %s1335_s18 }
 0x145   : > { %v2002_v25 = vpop.eup %2001  ;;  %v799_v27 = vmul.f32 %v791_v14, %v3233_v4  ;;  %v792_v29 = vmax.f32 %v786_v15, -100.0  ;;  %v788_v32 = vmul.f32 0.6931472, %v2000_v17  ;;  %2021 = vlog2.f32 %v2974_v20  ;;  %s2381_s25 = scalar_lea.vmem %s3387_s18, 3072  ;;  %s2385_s24 = sshll.u32 %s2497_s30, 4  ;;  %s2386_s24 = int_to_ptr.vmem [resolvable:$false] %s2385_s24 }
 0x146   : > { %v2004_v33 = vpop.eup %2003  ;;  %v796_v35 = vmul.f32 %v776_v21, %v2915_v2  ;;  %v777_v37 = vmax.f32 %v772_v24, -100.0  ;;  %v774_v40 = vmul.f32 0.6931472, %v2002_v25  ;;  %2023 = vlog2.f32 %v958_v62  ;;  %p2382_p10 = scmp.ne.s32.totalorder %s3387_s18, %s2381_s25  ;;  %s2387_s0 = scalar_lea.vmem %s2386_s24, 6144 }
 0x147   : > { %v2006_v18 = vpop.eup %2005  ;;  %v803_v41 = vadd.f32 %v799_v27, %v795_v19  ;;  %v800_v43 = vmul.f32 %v792_v29, %v3236_v7  ;;  %v793_v45 = vmax.f32 %v788_v32, -100.0  ;;  %v790_v48 = vmul.f32 0.6931472, %v2004_v33  ;;  %p2388_p4 = scmp.lt.s32.totalorder %s3387_s18, %s2386_s24  ;;  %p2389_p3 = scmp.lt.s32.totalorder %s2387_s0, %s2381_s25 }
 0x148   : > { %v2008_v49 = vpop.eup %2007  ;;  %v797_v50 = vmul.f32 %v777_v37, %v2923_v5  ;;  %v778_v52 = vmax.f32 %v774_v40, -100.0  ;;  %v856_v53 = vmul.f32 0.6931472, %v2006_v18  ;;  %2025 = vlog2.f32 %v2980_v22  ;;  %p2383_p11 = pnand %p2382_p10, %p3509_p12 }
 0x149   : > { %v2010_v20 = vpop.eup %2009  ;;  %v807_v54 = vsub.f32 0.0, %v803_v41  ;;  %v804_v55 = vadd.f32 %v800_v43, %v796_v35  ;;  %v801_v56 = vmul.f32 %v793_v45, %v3266_v12  ;;  %v794_v57 = vmax.f32 %v790_v48, -100.0  ;;  %s3385_s15 = scalar_lea.hbm %s3511_s20, %s3049_s27  ;;  %p2390_p7 = por %p2389_p3, %p2388_p4 }
 0x14a   : > { %v2012_v58 = vpop.eup %2011  ;;  %v798_v59 = vmul.f32 %v778_v52, %v2933_v9  ;;  %v863_v60 = vmax.f32 %v856_v53, -100.0  ;;  %v872_v61 = vmul.f32 0.6931472, %v2008_v49  ;;  %v858_v62 = vmul.f32 0.6931472, %v2010_v20  ;;  %p2384_p13 = pneg %p2383_p11 }
 0x14b   : > { %v2014_v1 = vpop.eup %2013  ;;  %v808_v3 = vsub.f32 0.0, %v804_v55  ;;  %v805_v6 = vadd.f32 %v801_v56, %v797_v50  ;;  %v802_v8 = vmul.f32 %v794_v57, %v3269_v16  ;;  %v874_v15 = vmul.f32 0.6931472, %v2012_v58  ;;  %819 = vst [vmem:[%s3284_s12] sm:$0xff] %v807_v54 }
 0x14c   : > { %v2016_v10 = vpop.eup %2015  ;;  %v879_v11 = vmax.f32 %v872_v61, -100.0  ;;  %v883_v13 = vmul.f32 %v863_v60, %v2909_v0  ;;  %v864_v14 = vmax.f32 %v858_v62, -100.0  ;;  %v860_v24 = vmul.f32 0.6931472, %v2014_v1  ;;  %p2391_p1 = pnand %p2390_p7, %p2384_p13 }
 0x14d   : > { %v2018_v17 = vpop.eup %2017  ;;  %v809_v19 = vsub.f32 0.0, %v805_v6  ;;  %v806_v21 = vadd.f32 %v802_v8, %v798_v59  ;;  %v880_v29 = vmax.f32 %v874_v15, -100.0  ;;  %v876_v33 = vmul.f32 0.6931472, %v2016_v10  ;;  %820 = vst [vmem:[%s3284_s12 + $0x8] sm:$0xff] %v808_v3 }
 0x14e   : > { %v2020_v25 = vpop.eup %2019  ;;  %v887_v27 = vmul.f32 %v879_v11, %v3233_v4  ;;  %v884_v32 = vmul.f32 %v864_v14, %v2915_v2  ;;  %v865_v40 = vmax.f32 %v860_v24, -100.0  ;;  %v862_v18 = vmul.f32 0.6931472, %v2018_v17 }
 0x14f   : > { %v2022_v35 = vpop.eup %2021  ;;  %v810_v37 = vsub.f32 0.0, %v806_v21  ;;  %v888_v45 = vmul.f32 %v880_v29, %v3236_v7  ;;  %v881_v48 = vmax.f32 %v876_v33, -100.0  ;;  %v878_v49 = vmul.f32 0.6931472, %v2020_v25  ;;  %821 = vst [vmem:[%s3284_s12 + $0x10] sm:$0xff] %v809_v19 }
 0x150   : > { %v2024_v41 = vpop.eup %2023  ;;  %v891_v43 = vadd.f32 %v887_v27, %v883_v13  ;;  %v885_v50 = vmul.f32 %v865_v40, %v2923_v5  ;;  %v866_v52 = vmax.f32 %v862_v18, -100.0  ;;  %v947_v53 = vmul.f32 0.6931472, %v2022_v35 }
 0x151   : > { %v892_v55 = vadd.f32 %v888_v45, %v884_v32  ;;  %v889_v56 = vmul.f32 %v881_v48, %v3266_v12  ;;  %v882_v57 = vmax.f32 %v878_v49, -100.0  ;;  %v960_v58 = vsub.f32 1.0, %v2983_v23  ;;  %822 = vst [vmem:[%s3284_s12 + $0x18] sm:$0xff] %v810_v37 }
 0x152   : > { %v2026_v20 = vpop.eup %2025  ;;  %v895_v54 = vsub.f32 0.0, %v891_v43  ;;  %v886_v59 = vmul.f32 %v866_v52, %v2933_v9  ;;  %v954_v60 = vmax.f32 %v947_v53, -100.0  ;;  %v963_v61 = vmul.f32 0.6931472, %v2024_v41 }
 0x153   : > { %v896_v62 = vsub.f32 0.0, %v892_v55  ;;  %v893_v1 = vadd.f32 %v889_v56, %v885_v50  ;;  %v890_v3 = vmul.f32 %v882_v57, %v3269_v16  ;;  %v961_v6 = vsub.f32 1.0, %v2991_v26 }
 0x154   : > { %v970_v8 = vmax.f32 %v963_v61, -100.0  ;;  %v974_v10 = vmul.f32 %v954_v60, %v2909_v0  ;;  %2027 = vlog2.f32 %v959_v63  ;;  %1743 = vst [vmem:[%s3284_s12 + $0x20] sm:$0xff] %v895_v54  ;;  %v1049_v14 = vsub.f32 1.0, %v2998_v28 }
 0x155   : > { %v897_v11 = vsub.f32 0.0, %v893_v1  ;;  %v894_v13 = vadd.f32 %v890_v3, %v886_v59  ;;  %2029 = vlog2.f32 %v2983_v23  ;;  %1744 = vst [vmem:[%s3284_s12 + $0x28] sm:$0xff] %v896_v62  ;;  %v1050_v19 = vsub.f32 1.0, %v3004_v30 }
 0x156   : > { %v978_v15 = vmul.f32 %v970_v8, %v3233_v4  ;;  %2031 = vlog2.f32 %v960_v58  ;;  %v949_v22 = vmul.f32 0.6931472, %v2026_v20  ;;  %v1051_v23 = vsub.f32 1.0, %v3007_v31 }
 0x157   : > { %v898_v17 = vsub.f32 0.0, %v894_v13  ;;  %2033 = vlog2.f32 %v2991_v26  ;;  %1745 = vst [vmem:[%s3284_s12 + $0x30] sm:$0xff] %v897_v11  ;;  %v1052_v24 = vsub.f32 1.0, %v3015_v34  ;;  %v1140_v27 = vsub.f32 1.0, %v3022_v36 }
 0x158   : > { %v982_v21 = vadd.f32 %v978_v15, %v974_v10  ;;  %2035 = vlog2.f32 %v961_v6  ;;  %v955_v26 = vmax.f32 %v949_v22, -100.0  ;;  %v1141_v33 = vsub.f32 1.0, %v3028_v38 }
 0x159   : > { %2037 = vlog2.f32 %v2998_v28  ;;  %1746 = vst [vmem:[%s3284_s12 + $0x38] sm:$0xff] %v898_v17  ;;  %v1142_v41 = vsub.f32 1.0, %v3031_v39 }
 0x15a   : > { %v986_v63 = vsub.f32 0.0, %v982_v21  ;;  %2039 = vlog2.f32 %v1049_v14  ;;  %v975_v40 = vmul.f32 %v955_v26, %v2915_v2 }
 0x15b   : > { %2041 = vlog2.f32 %v3004_v30 }
 0x15c   : > { %2043 = vlog2.f32 %v1050_v19  ;;  %1767 = vst [vmem:[%s3284_s12 + $0x40] sm:$0xff] %v986_v63 }
 0x15d   : > { %2045 = vlog2.f32 %v3007_v31 }
 0x15e   : > { %v2028_v25 = vpop.eup %2027  ;;  %2047 = vlog2.f32 %v1051_v23 }
 0x15f   : > { %v2030_v29 = vpop.eup %2029  ;;  %v965_v28 = vmul.f32 0.6931472, %v2028_v25  ;;  %2049 = vlog2.f32 %v3015_v34 }
 0x160   : > { %v2032_v32 = vpop.eup %2031  ;;  %v951_v35 = vmul.f32 0.6931472, %v2030_v29  ;;  %2051 = vlog2.f32 %v1052_v24 }
 0x161   : > { %v2034_v30 = vpop.eup %2033  ;;  %v971_v37 = vmax.f32 %v965_v28, -100.0  ;;  %v967_v18 = vmul.f32 0.6931472, %v2032_v32  ;;  %2053 = vlog2.f32 %v3022_v36 }
 0x162   : > { %v2036_v31 = vpop.eup %2035  ;;  %v956_v43 = vmax.f32 %v951_v35, -100.0  ;;  %v953_v45 = vmul.f32 0.6931472, %v2034_v30  ;;  %2055 = vlog2.f32 %v1140_v27 }
 0x163   : > { %v2038_v48 = vpop.eup %2037  ;;  %v979_v34 = vmul.f32 %v971_v37, %v3236_v7  ;;  %v972_v49 = vmax.f32 %v967_v18, -100.0  ;;  %v969_v50 = vmul.f32 0.6931472, %v2036_v31  ;;  %2057 = vlog2.f32 %v3028_v38 }
 0x164   : > { %v2040_v52 = vpop.eup %2039  ;;  %v976_v53 = vmul.f32 %v956_v43, %v2923_v5  ;;  %v957_v20 = vmax.f32 %v953_v45, -100.0  ;;  %v1038_v54 = vmul.f32 0.6931472, %v2038_v48  ;;  %2059 = vlog2.f32 %v1141_v33 }
 0x165   : > { %v2042_v36 = vpop.eup %2041  ;;  %v983_v55 = vadd.f32 %v979_v34, %v975_v40  ;;  %v980_v56 = vmul.f32 %v972_v49, %v3266_v12  ;;  %v973_v57 = vmax.f32 %v969_v50, -100.0  ;;  %v1054_v58 = vmul.f32 0.6931472, %v2040_v52 }
 0x166   : > { %v2044_v59 = vpop.eup %2043  ;;  %v977_v60 = vmul.f32 %v957_v20, %v2933_v9  ;;  %v1045_v61 = vmax.f32 %v1038_v54, -100.0  ;;  %v1040_v62 = vmul.f32 0.6931472, %v2042_v36  ;;  %2061 = vlog2.f32 %v3031_v39 }
 0x167   : > { %v2046_v38 = vpop.eup %2045  ;;  %v987_v1 = vsub.f32 0.0, %v983_v55  ;;  %v984_v3 = vadd.f32 %v980_v56, %v976_v53  ;;  %v981_v6 = vmul.f32 %v973_v57, %v3269_v16  ;;  %v1061_v8 = vmax.f32 %v1054_v58, -100.0 }
 0x168   : > { %v2048_v10 = vpop.eup %2047  ;;  %v1065_v11 = vmul.f32 %v1045_v61, %v2909_v0  ;;  %v1046_v13 = vmax.f32 %v1040_v62, -100.0  ;;  %v1056_v14 = vmul.f32 0.6931472, %v2044_v59  ;;  %v1042_v15 = vmul.f32 0.6931472, %v2046_v38 }
 0x169   : > { %v2050_v17 = vpop.eup %2049  ;;  %v988_v19 = vsub.f32 0.0, %v984_v3  ;;  %v985_v21 = vadd.f32 %v981_v6, %v977_v60  ;;  %v1069_v22 = vmul.f32 %v1061_v8, %v3233_v4  ;;  %v1058_v25 = vmul.f32 0.6931472, %v2048_v10  ;;  %1768 = vst [vmem:[%s3284_s12 + $0x48] sm:$0xff] %v987_v1 }
 0x16a   : > { %v2052_v23 = vpop.eup %2051  ;;  %v1062_v63 = vmax.f32 %v1056_v14, -100.0  ;;  %v1066_v24 = vmul.f32 %v1046_v13, %v2915_v2  ;;  %v1047_v26 = vmax.f32 %v1042_v15, -100.0  ;;  %v1044_v32 = vmul.f32 0.6931472, %v2050_v17 }
 0x16b   : > { %v2054_v27 = vpop.eup %2053  ;;  %v989_v29 = vsub.f32 0.0, %v985_v21  ;;  %v1073_v28 = vadd.f32 %v1069_v22, %v1065_v11  ;;  %v1063_v30 = vmax.f32 %v1058_v25, -100.0  ;;  %v1060_v40 = vmul.f32 0.6931472, %v2052_v23  ;;  %1769 = vst [vmem:[%s3284_s12 + $0x50] sm:$0xff] %v988_v19 }
 0x16c   : > { %v2056_v33 = vpop.eup %2055  ;;  %v1070_v35 = vmul.f32 %v1062_v63, %v3236_v7  ;;  %v1067_v37 = vmul.f32 %v1047_v26, %v2923_v5  ;;  %v1048_v43 = vmax.f32 %v1044_v32, -100.0  ;;  %v1129_v45 = vmul.f32 0.6931472, %v2054_v27 }
 0x16d   : > { %v2058_v18 = vpop.eup %2057  ;;  %v1077_v31 = vsub.f32 0.0, %v1073_v28  ;;  %v1071_v49 = vmul.f32 %v1063_v30, %v3266_v12  ;;  %v1064_v50 = vmax.f32 %v1060_v40, -100.0  ;;  %v1145_v52 = vmul.f32 0.6931472, %v2056_v33  ;;  %1770 = vst [vmem:[%s3284_s12 + $0x58] sm:$0xff] %v989_v29 }
 0x16e   : > { %v2060_v48 = vpop.eup %2059  ;;  %v1074_v34 = vadd.f32 %v1070_v35, %v1066_v24  ;;  %v1068_v53 = vmul.f32 %v1048_v43, %v2933_v9  ;;  %v1136_v20 = vmax.f32 %v1129_v45, -100.0  ;;  %v1131_v54 = vmul.f32 0.6931472, %v2058_v18 }
 0x16f   : > { %v1075_v56 = vadd.f32 %v1071_v49, %v1067_v37  ;;  %v1072_v57 = vmul.f32 %v1064_v50, %v3269_v16  ;;  %v1152_v58 = vmax.f32 %v1145_v52, -100.0  ;;  %v1143_v59 = vsub.f32 1.0, %v3039_v42  ;;  %1791 = vst [vmem:[%s3284_s12 + $0x60] sm:$0xff] %v1077_v31 }
 0x170   : > { %v2062_v36 = vpop.eup %2061  ;;  %v1078_v55 = vsub.f32 0.0, %v1074_v34  ;;  %v1156_v60 = vmul.f32 %v1136_v20, %v2909_v0  ;;  %v1137_v61 = vmax.f32 %v1131_v54, -100.0  ;;  %v1147_v62 = vmul.f32 0.6931472, %v2060_v48 }
 0x171   : > { %v1079_v38 = vsub.f32 0.0, %v1075_v56  ;;  %v1076_v1 = vadd.f32 %v1072_v57, %v1068_v53  ;;  %v1160_v3 = vmul.f32 %v1152_v58, %v3233_v4  ;;  %v1231_v6 = vsub.f32 1.0, %v3046_v44 }
 0x172   : > { %v1153_v8 = vmax.f32 %v1147_v62, -100.0  ;;  %v1157_v10 = vmul.f32 %v1137_v61, %v2915_v2  ;;  %2063 = vlog2.f32 %v1142_v41  ;;  %1792 = vst [vmem:[%s3284_s12 + $0x68] sm:$0xff] %v1078_v55  ;;  %v1232_v14 = vsub.f32 1.0, %v3055_v46 }
 0x173   : > { %v1080_v11 = vsub.f32 0.0, %v1076_v1  ;;  %v1164_v13 = vadd.f32 %v1160_v3, %v1156_v60  ;;  %2065 = vlog2.f32 %v3039_v42  ;;  %1793 = vst [vmem:[%s3284_s12 + $0x70] sm:$0xff] %v1079_v38  ;;  %v1233_v19 = vsub.f32 1.0, %v3058_v47  ;;  %v2085_v1 = vld [vmem:[%s2906_s21 + $0x10] sm:$0xff] }
 0x174   : > { %v1161_v15 = vmul.f32 %v1153_v8, %v3236_v7  ;;  %2067 = vlog2.f32 %v1143_v59  ;;  %v1133_v41 = vmul.f32 0.6931472, %v2062_v36  ;;  %v1234_v42 = vsub.f32 1.0, %v3069_v51 }
 0x175   : > { %v1168_v17 = vsub.f32 0.0, %v1164_v13  ;;  %2069 = vlog2.f32 %v3046_v44  ;;  %1794 = vst [vmem:[%s3284_s12 + $0x78] sm:$0xff] %v1080_v11  ;;  %v2086_v13 = vld [vmem:[%s2906_s21 + $0x18] sm:$0xff]  ;;  %s1307_s21 = scalar_lea.sflag [#allocation4], %s2856_s28 }
 0x176   : > { %v1165_v39 = vadd.f32 %v1161_v15, %v1157_v10  ;;  %2071 = vlog2.f32 %v1231_v6  ;;  %v1138_v22 = vmax.f32 %v1133_v41, -100.0 }
 0x177   : > { %2073 = vlog2.f32 %v3055_v46  ;;  %1815 = vst [vmem:[%s3284_s12 + $0x80] sm:$0xff] %v1168_v17 }
 0x178   : > { %v1169_v21 = vsub.f32 0.0, %v1165_v39  ;;  %2075 = vlog2.f32 %v1232_v14  ;;  %v1158_v27 = vmul.f32 %v1138_v22, %v2923_v5 }
 0x179   : > { %2077 = vlog2.f32 %v3058_v47 }
 0x17a   : > { %2079 = vlog2.f32 %v1233_v19  ;;  %1816 = vst [vmem:[%s3284_s12 + $0x88] sm:$0xff] %v1169_v21 }
 0x17b   : > { %2081 = vlog2.f32 %v3069_v51 }
 0x17c   : > { %v2064_v44 = vpop.eup %2063  ;;  %2083 = vlog2.f32 %v1234_v42 }
 0x17d   : > { %v2066_v23 = vpop.eup %2065  ;;  %v1149_v63 = vmul.f32 0.6931472, %v2064_v44 }
 0x17e   : > { %v2068_v24 = vpop.eup %2067  ;;  %v1135_v26 = vmul.f32 0.6931472, %v2066_v23 }
 0x17f   : > { %v2070_v25 = vpop.eup %2069  ;;  %v1154_v46 = vmax.f32 %v1149_v63, -100.0  ;;  %v1151_v29 = vmul.f32 0.6931472, %v2068_v24 }
 0x180   : > { %v2072_v28 = vpop.eup %2071  ;;  %v1139_v32 = vmax.f32 %v1135_v26, -100.0  ;;  %v1220_v33 = vmul.f32 0.6931472, %v2070_v25 }
 0x181   : > { %v2074_v47 = vpop.eup %2073  ;;  %v1162_v35 = vmul.f32 %v1154_v46, %v3266_v12  ;;  %v1155_v30 = vmax.f32 %v1151_v29, -100.0  ;;  %v1236_v51 = vmul.f32 0.6931472, %v2072_v28 }
 0x182   : > { %v2076_v37 = vpop.eup %2075  ;;  %v1159_v40 = vmul.f32 %v1139_v32, %v2933_v9  ;;  %v1227_v18 = vmax.f32 %v1220_v33, -100.0  ;;  %v1222_v31 = vmul.f32 0.6931472, %v2074_v47 }
 0x183   : > { %v2078_v43 = vpop.eup %2077  ;;  %v1166_v45 = vadd.f32 %v1162_v35, %v1158_v27  ;;  %v1163_v48 = vmul.f32 %v1155_v30, %v3269_v16  ;;  %v1243_v34 = vmax.f32 %v1236_v51, -100.0  ;;  %v1238_v5 = vmul.f32 0.6931472, %v2076_v37 }
 0x184   : > { %v2080_v49 = vpop.eup %2079  ;;  %v1247_v50 = vmul.f32 %v1227_v18, %v2909_v0  ;;  %v1228_v52 = vmax.f32 %v1222_v31, -100.0  ;;  %v1224_v53 = vmul.f32 0.6931472, %v2078_v43 }
 0x185   : > { %v2082_v20 = vpop.eup %2081  ;;  %v1170_v54 = vsub.f32 0.0, %v1166_v45  ;;  %v1167_v36 = vadd.f32 %v1163_v48, %v1159_v40  ;;  %v1251_v9 = vmul.f32 %v1243_v34, %v3233_v4  ;;  %v1244_v55 = vmax.f32 %v1238_v5, -100.0 }
 0x186   : > { %v2084_v56 = vpop.eup %2083  ;;  %v1248_v57 = vmul.f32 %v1228_v52, %v2915_v2  ;;  %v1229_v58 = vmax.f32 %v1224_v53, -100.0  ;;  %v1240_v59 = vmul.f32 0.6931472, %v2080_v49  ;;  %v1226_v60 = vmul.f32 0.6931472, %v2082_v20 }
 0x187   : > { %v1171_v61 = vsub.f32 0.0, %v1167_v36  ;;  %v1255_v0 = vadd.f32 %v1251_v9, %v1247_v50  ;;  %v1252_v62 = vmul.f32 %v1244_v55, %v3236_v7  ;;  %v1242_v4 = vmul.f32 0.6931472, %v2084_v56  ;;  %1817 = vst [vmem:[%s3284_s12 + $0x90] sm:$0xff] %v1170_v54 }
 0x188   : > { %v1245_v38 = vmax.f32 %v1240_v59, -100.0  ;;  %v1249_v3 = vmul.f32 %v2085_v1, %v1229_v58  ;;  %v1230_v6 = vmax.f32 %v1226_v60, -100.0 }
 0x189   : > { %v1259_v8 = vsub.f32 0.0, %v1255_v0  ;;  %v1256_v2 = vadd.f32 %v1252_v62, %v1248_v57  ;;  %v1246_v11 = vmax.f32 %v1242_v4, -100.0  ;;  %1818 = vst [vmem:[%s3284_s12 + $0x98] sm:$0xff] %v1171_v61 }
 0x18a   : > { %v1253_v10 = vmul.f32 %v1245_v38, %v3266_v12  ;;  %v1250_v7 = vmul.f32 %v2086_v13, %v1230_v6 }
 0x18b   : > { %v1260_v14 = vsub.f32 0.0, %v1256_v2  ;;  %v1254_v17 = vmul.f32 %v1246_v11, %v3269_v16  ;;  %1839 = vst [vmem:[%s3284_s12 + $0xa0] sm:$0xff] %v1259_v8 }
 0x18c   : > { %v1257_v15 = vadd.f32 %v1253_v10, %v1249_v3 }
 0x18d   : > { %v1258_v39 = vadd.f32 %v1254_v17, %v1250_v7  ;;  %1840 = vst [vmem:[%s3284_s12 + $0xa8] sm:$0xff] %v1260_v14 }
 0x18e   : > { %v1261_v19 = vsub.f32 0.0, %v1257_v15 }
 0x18f   : > { %v1262_v41 = vsub.f32 0.0, %v1258_v39 }
 0x190   : > { %1841 = vst [vmem:[%s3284_s12 + $0xb0] sm:$0xff] %v1261_v19 }
 0x191   : > { %1842 = vst [vmem:[%s3284_s12 + $0xb8] sm:$0xff] %v1262_v41 }
 0x192   : > { %2394 = shalt.err (!%p2391_p1)
}
 0x193   : > { %s2395_s27 = scalar_lea.hbm %s3385_s15, 3072  ;;  %s2399_s16 = scalar_lea.hbm %s3511_s20, 6144 }
 0x194   : > { %p2396_p6 = scmp.ne.s32.totalorder %s3385_s15, %s2395_s27  ;;  %p2400_p2 = scmp.lt.u32.totalorder %s3385_s15, %s3511_s20 }
 0x195   : > { %p2401_p0 = scmp.lt.u32.totalorder %s2399_s16, %s2395_s27  ;;  %p2403_p10 = scmp.lt.u32.totalorder %s2395_s27, %s3385_s15 }
 0x196   : > { %p2397_p5 = pnand %p2396_p6, %p3509_p12 }
 0x197   : > { %p2402_p9 = por %p2401_p0, %p2400_p2 }
 0x198   : > { %p2398_p8 = pneg %p2397_p5 }
 0x199   : > { %p2404_p11 = por %p2403_p10, %p2402_p9 }
 0x19b   : > { %p2405_p13 = pnand %p2404_p11, %p2398_p8 }
 0x19d   : > { %2408 = shalt.err (!%p2405_p13)
}
 0x19e   : > { %1893 = dma.vmem_to_hbm [thread:$0]  (%p3509_p12), %s3387_s18, 3072, %s3385_s15, %s1307_s21, %s2494_s9, %s2494_s9, %s2495_s5  }
 0x19f PF: > { %s3512_s22 = sld [smem:[#allocation27_spill]]  ;;  %s3513_s7 = sld [smem:[#allocation33_spill]] }
 0x1a0   : > { %s3514_s3 = sld [smem:[#allocation30_spill]] }
 0x1a5   : > { %s1396_s12 = sand.u32 1, %s3512_s22   ;;  %p3515_p4 = scmp.ne.s32.totalorder %s3513_s7, 0 }
 0x1a6   : > { %p3516_p3 = scmp.ge.s32.totalorder %s3514_s3, 2  ;;  %s1397_s11 = scalar_lea.sflag [#allocation4], %s1396_s12 }
 0x1a8   : > { %p1924_p7 = pnand %p3516_p3, %p3515_p4 }
 0x1aa   : > { %2450 = dma.done.wait (!%p1924_p7), %s1397_s11, 3072  }
 0x1ab   : > { %2452 = vsyncadd (!%p1924_p7), %s1397_s11, 4294964224  ;;  %s3517_s26 = sadd.s32 4294967294, %s3514_s3  }
 0x1ac   : > { %s1405_s19 = sand.u32 1, %s3517_s26  }
 0x1ad   : > { %s1406_s25 = scalar_lea.sflag [#allocation16], %s1405_s19 }
 0x1ae   : > { %2454 = dma.done.wait (!%p1924_p7), %s1406_s25, 6144  }
 0x1af   : > { %2456 = vsyncadd (!%p1924_p7), %s1406_s25, 4294961152  ;;  %s1424_s28 = scalar_lea.sflag [#allocation19], %s1396_s12 }
 0x1b0   : > { %2458 = dma.done.wait (!%p1924_p7), %s1424_s28, 512  }
 0x1b1   : > { %2460 = vsyncadd (!%p1924_p7), %s1424_s28, 4294966784  ;;  %s42_s18 = sadd.s32 1, %s3514_s3   ;;  %s3518_s9 = sld [smem:[#allocation28_spill]] }
 0x1b2   : > { %p39_p12 = scmp.ge.s32.totalorder %s42_s18, 4   ;;  %s3519_s15 = sld [smem:[#allocation32_spill]] }
 0x1b3   : > { %s3520_s16 = sld [smem:[#allocation29_spill]]  ;;  %s3521_s17 = sld [smem:[#allocation31_spill]] }
 0x1b4   : > { %s3522_s13 = smov %s2467_s14  ;;  %41 = sbr.rel (!%p39_p12) target bundleno = 23 (0x17), region = 233 }
 0x1b7   : > { %s3523_s14 = smov %s3518_s9 }
 0x1bb   :  { %1429 = vsyncpa [#allocation3], 1 }
 0x1bc   :  { %1431 = vsyncpa [#allocation3 + $0x1], 1 }
 0x1bd   :  { %1432 = vsyncpa [#allocation6], 1 }
 0x1be   :  { %1434 = vsyncpa [#allocation6 + $0x1], 1 }
 0x1bf   :  { %1435 = vsyncpa [#allocation9], 1 }
 0x1c0   :  { %1437 = vsyncpa [#allocation9 + $0x1], 1 }
 0x1c1   :  { %1438 = vsyncpa [#allocation12], 1 }
 0x1c2   :  { %1440 = vsyncpa [#allocation12 + $0x1], 1 }
 0x1c3   :  { %1441 = vsyncpa [#allocation4], 1 }
 0x1c4   :  { %1443 = vsyncpa [#allocation4 + $0x1], 1 }
 0x1c5   :  { %1444 = vsyncpa [#allocation16], 1 }
 0x1c6   :  { %1446 = vsyncpa [#allocation16 + $0x1], 1 }
 0x1c7   :  { %1447 = vsyncpa [#allocation19], 1 }
 0x1c8   :  { %1449 = vsyncpa [#allocation19 + $0x1], 1 }

</bundles_post_ra>
